<compile_context>
chip_gen: v7x
topology: tpu7x:2x2x1
jax: 0.10.0
libtpu: 0.0.40
codegen_flags: <defaults>
</compile_context>

<pallas_src>
import functools
import math

import jax
import jax.numpy as jnp
from jax import lax
from jax.experimental import pallas as pl
from jax.experimental.pallas import tpu as pltpu


def _conv_band_kernel(x_ref, w_ref, b_ref, o_ref, *,
                      kh, kw, sh, sw, dh, dw, toh, OW, CoutS):
    """One (image, output-row-band) step: fused im2col + matmul + bias.

    x_ref: (1, 1, BH, Wpad, Cin)  bf16 padded-NHWC row band (with halo rows)
    w_ref: (KK, Cin, CoutP)       bf16 per-tap composed weights
    b_ref: (1, CoutP)             f32 bias row (zero-padded)
    o_ref: (1, 1, CoutS, MT)      f32 channel-major output tile, MT = toh*OW
    """
    Cin = w_ref.shape[1]
    CoutP = w_ref.shape[2]
    MT = toh * OW

    # Bias folded into the accumulator init (sublane broadcast, one-time).
    acc = jnp.broadcast_to(b_ref[...], (MT, CoutP)).astype(jnp.float32)

    # kh*kw shifted (MT, Cin) x (Cin, CoutP) MXU matmuls; taps are built in
    # VMEM by slicing the resident row band -- no patch matrix ever hits HBM.
    for i in range(kh):
        for j in range(kw):
            rsl = pl.ds(i * dh, toh) if sh == 1 else pl.ds(i * dh, toh, stride=sh)
            csl = pl.ds(j * dw, OW) if sw == 1 else pl.ds(j * dw, OW, stride=sw)
            xk = x_ref[0, 0, rsl, csl, :]          # (toh, OW, Cin) bf16
            xk = xk.reshape(MT, Cin)               # lane dim (Cin) unchanged -> free
            acc = acc + jnp.dot(xk, w_ref[i * kw + j],
                                preferred_element_type=jnp.float32)

    # One XLU transpose -> channel-major tile with a lane-dense (MT) last dim;
    # only the real (sublane-rounded) channels are stored to HBM.
    res = acc.T                                    # (CoutP, MT)
    o_ref[0, 0] = res[:CoutS, :].astype(o_ref.dtype)


def low_rank_conv2d(x, G, H, bias, *, kernel_size, stride=(1, 1),
                    padding=(0, 0), dilation=(1, 1),
                    compute_dtype=jnp.bfloat16):
    """Forward pass equivalent to LowRankConv2d.forward (x is NCHW, f32 out)."""
    N, Cin, Hin, Win = x.shape
    kh, kw = kernel_size
    sh, sw = stride
    ph, pw = padding
    dh, dw = dilation
    KK = kh * kw
    Cout = H.shape[1]

    OH = (Hin + 2 * ph - dh * (kh - 1) - 1) // sh + 1
    OW = (Win + 2 * pw - dw * (kw - 1) - 1) // sw + 1
    Hpad, Wpad = Hin + 2 * ph, Win + 2 * pw

    CoutP = ((Cout + 127) // 128) * 128            # matmul / accumulator N dim
    CoutS = ((Cout + 7) // 8) * 8                  # stored channels (sublane rounded)

    # ---- parameter glue (tiny, f32): compose per-tap weights from the factors.
    #      W[o, c, a, b] = (H[k] @ G[k])[o, c] with k = a*kw + b, matching
    #      torch.bmm(H, G).permute(1, 2, 0).reshape(Cout, Cin, kh, kw).
    M = jnp.einsum('kor,kri->koi', H, G)           # (KK, Cout, Cin)
    Wt = jnp.transpose(M, (0, 2, 1))               # (KK, Cin, Cout)
    Wt = jnp.pad(Wt, ((0, 0), (0, 0), (0, CoutP - Cout))).astype(compute_dtype)
    if bias is None:
        b_row = jnp.zeros((1, CoutP), jnp.float32)
    else:
        b_row = jnp.pad(bias.astype(jnp.float32), (0, CoutP - Cout)).reshape(1, CoutP)

    # ---- activations: single layout pass NCHW -> padded NHWC, bf16 operands
    x_nhwc = jnp.transpose(x, (0, 2, 3, 1))
    x_nhwc = jnp.pad(x_nhwc, ((0, 0), (ph, ph), (pw, pw), (0, 0))).astype(compute_dtype)

    # ---- pick output-row band size: biggest band that fits a small VMEM budget
    itemsize = jnp.dtype(compute_dtype).itemsize

    def band_rows(t):
        return (t - 1) * sh + (kh - 1) * dh + 1

    def fits(t):
        band_b = band_rows(t) * Wpad * Cin * itemsize
        acc_b = t * OW * CoutP * 4
        out_b = t * OW * CoutS * 4
        return band_b <= (2 << 20) and (acc_b + out_b) <= (12 << 20)

    toh = 1
    for cand in range(OH, 0, -1):                  # exact divisor -> no ragged band
        if OH % cand == 0 and fits(cand):
            toh = cand
            break
    T = OH // toh
    MT = toh * OW

    if T == 1:
        x_bands = x_nhwc[:, None]                  # (N, 1, Hpad, Wpad, Cin)
    else:
        # Only the (kh-1)*dh halo rows per band get duplicated (<< kh*kw x of im2col).
        bh = band_rows(toh)
        x_bands = jnp.stack(
            [x_nhwc[:, t * toh * sh: t * toh * sh + bh] for t in range(T)], axis=1)
    BH = x_bands.shape[2]

    # ---- VMEM budget (respect v5e 16 MiB default / v7x 64 MiB physical)
    est_vmem = (3 * BH * Wpad * Cin * itemsize     # x band pipeline buffers
                + 2 * KK * Cin * CoutP * itemsize  # resident per-tap weights
                + 2 * CoutP * 4                    # bias
                + 2 * CoutS * MT * 4               # output tiles
                + MT * CoutP * 4                   # f32 accumulator
                + 2 * MT * Cin * itemsize)         # tap slices in flight
    vmem_limit = int(min(48 * 2**20, max(32 * 2**20, 4 * est_vmem)))

    kernel = functools.partial(
        _conv_band_kernel,
        kh=kh, kw=kw, sh=sh, sw=sw, dh=dh, dw=dw, toh=toh, OW=OW, CoutS=CoutS)

    out = pl.pallas_call(
        kernel,
        out_shape=jax.ShapeDtypeStruct((N, T, CoutS, MT), jnp.float32),
        grid_spec=pltpu.PrefetchScalarGridSpec(
            num_scalar_prefetch=0,
            grid=(N, T),
            in_specs=[
                pl.BlockSpec((1, 1, BH, Wpad, Cin), lambda n, t: (n, t, 0, 0, 0)),
                pl.BlockSpec((KK, Cin, CoutP), lambda n, t: (0, 0, 0)),
                pl.BlockSpec((1, CoutP), lambda n, t: (0, 0)),
            ],
            out_specs=pl.BlockSpec((1, 1, CoutS, MT), lambda n, t: (n, t, 0, 0)),
        ),
        compiler_params=pltpu.CompilerParams(
            dimension_semantics=("parallel", "parallel"),
            vmem_limit_bytes=vmem_limit,
        ),
    )(x_bands, Wt, b_row)

    # Back to NCHW: channel slice + reshape only.  The (T <-> C) transpose is a
    # no-op when T == 1 (the common/benchmark case); for T > 1 it touches only
    # the true-sized output once.
    out = out.reshape(N, T, CoutS, toh, OW)[:, :, :Cout]
    out = out.transpose(0, 2, 1, 3, 4).reshape(N, Cout, OH, OW)
    return out


if __name__ == "__main__":
    # Module hyperparameters (small, consistent with LowRankConv2d.__init__)
    in_channels, out_channels = 4, 8
    kernel_size = (3, 3)
    stride = (1, 1)
    padding = (1, 1)
    dilation = (1, 1)
    rank = 2
    N, Hin, Win = 2, 16, 16
    KK = kernel_size[0] * kernel_size[1]

    key = jax.random.PRNGKey(0)
    kx, kg, kh_, kb = jax.random.split(key, 4)

    bound_g = 1.0 / math.sqrt(in_channels)
    bound_h = 1.0 / math.sqrt(rank)
    G = jax.random.uniform(kg, (KK, rank, in_channels), jnp.float32,
                           minval=-bound_g, maxval=bound_g)
    H = jax.random.uniform(kh_, (KK, out_channels, rank), jnp.float32,
                           minval=-bound_h, maxval=bound_h)
    bias = jax.random.uniform(kb, (out_channels,), jnp.float32,
                              minval=-bound_g, maxval=bound_g)
    x = jax.random.normal(kx, (N, in_channels, Hin, Win), jnp.float32)

    out = low_rank_conv2d(x, G, H, bias, kernel_size=kernel_size,
                          stride=stride, padding=padding, dilation=dilation)
    out = jax.block_until_ready(out)

    # Reference: same composed weight; operands rounded to bf16 exactly like the
    # kernel's MXU inputs, f32 accumulation -> only summation-order differences.
    Mref = jnp.einsum('kor,kri->koi', H, G)
    Wref = jnp.transpose(Mref, (1, 2, 0)).reshape(out_channels, in_channels, *kernel_size)
    x_q = x.astype(jnp.bfloat16).astype(jnp.float32)
    W_q = Wref.astype(jnp.bfloat16).astype(jnp.float32)
    ref = lax.conv_general_dilated(
        x_q, W_q, window_strides=stride,
        padding=[(padding[0], padding[0]), (padding[1], padding[1])],
        rhs_dilation=dilation,
        dimension_numbers=('NCHW', 'OIHW', 'NCHW'),
        precision=lax.Precision.HIGHEST) + bias[None, :, None, None]

    assert out.shape == ref.shape, (out.shape, ref.shape)
    max_err = float(jnp.max(jnp.abs(out - ref)))
    assert jnp.allclose(out, ref, atol=1e-3, rtol=1e-3), max_err

    print("KERNEL_OK")
</pallas_src>

<mosaic_0001>
module attributes {stable_mosaic.version = 11 : i64} {
  func.func @_conv_band_kernel(%arg0: i32, %arg1: i32, %arg2: memref<1x1x18x18x4xbf16, #tpu.memory_space<vmem>>, %arg3: memref<9x4x128xbf16, #tpu.memory_space<vmem>>, %arg4: memref<1x128xf32, #tpu.memory_space<vmem>>, %arg5: memref<1x1x8x256xf32, #tpu.memory_space<vmem>>) attributes {dimension_semantics = [#tpu.dimension_semantics<parallel>, #tpu.dimension_semantics<parallel>], iteration_bounds = array<i64: 2, 1>, scalar_prefetch = 0 : i64, scratch_operands = 0 : i64, tpu.core_type = #tpu.core_type<tc>, window_params = [{transform_indices = @transform_0, window_bounds = array<i64: 1, 1, 18, 18, 4>}, {pipeline_mode = #tpu.pipeline_mode<synchronous>, transform_indices = @transform_1, window_bounds = array<i64: 9, 4, 128>}, {pipeline_mode = #tpu.pipeline_mode<synchronous>, transform_indices = @transform_2, window_bounds = array<i64: 1, 128>}, {transform_indices = @transform_3, window_bounds = array<i64: 1, 1, 8, 256>}]} {
    %c0 = arith.constant 0 : index
    %c0_0 = arith.constant 0 : index
    %0 = vector.load %arg4[%c0, %c0_0] : memref<1x128xf32, #tpu.memory_space<vmem>>, vector<1x128xf32>
    %1 = vector.shape_cast %0 : vector<1x128xf32> to vector<1x128xf32>
    %2 = vector.broadcast %1 : vector<1x128xf32> to vector<256x128xf32>
    %c0_1 = arith.constant 0 : index
    %c0_2 = arith.constant 0 : index
    %c0_3 = arith.constant 0 : index
    %c0_4 = arith.constant 0 : index
    %c0_5 = arith.constant 0 : index
    %3 = vector.load %arg2[%c0_1, %c0_2, %c0_3, %c0_4, %c0_5] : memref<1x1x18x18x4xbf16, #tpu.memory_space<vmem>>, vector<1x1x16x16x4xbf16>
    %4 = vector.shape_cast %3 : vector<1x1x16x16x4xbf16> to vector<16x16x4xbf16>
    %5 = vector.shape_cast %4 : vector<16x16x4xbf16> to vector<256x4xbf16>
    %c0_6 = arith.constant 0 : index
    %c0_7 = arith.constant 0 : index
    %c0_8 = arith.constant 0 : index
    %6 = vector.load %arg3[%c0_6, %c0_7, %c0_8] : memref<9x4x128xbf16, #tpu.memory_space<vmem>>, vector<1x4x128xbf16>
    %7 = vector.shape_cast %6 : vector<1x4x128xbf16> to vector<4x128xbf16>
    %cst = arith.constant dense<0.000000e+00> : vector<256x128xf32>
    %8 = tpu.matmul %5, %7, %cst {dimension_numbers = #tpu.dot_dimension_numbers<[1], [0], [0], [1], [0, 0, 1, 1], [], []>} : vector<256x4xbf16>, vector<4x128xbf16>, vector<256x128xf32> -> vector<256x128xf32>
    %9 = arith.addf %2, %8 : vector<256x128xf32>
    %c0_9 = arith.constant 0 : index
    %c0_10 = arith.constant 0 : index
    %c0_11 = arith.constant 0 : index
    %c1 = arith.constant 1 : index
    %c0_12 = arith.constant 0 : index
    %10 = vector.load %arg2[%c0_9, %c0_10, %c0_11, %c1, %c0_12] : memref<1x1x18x18x4xbf16, #tpu.memory_space<vmem>>, vector<1x1x16x16x4xbf16>
    %11 = vector.shape_cast %10 : vector<1x1x16x16x4xbf16> to vector<16x16x4xbf16>
    %12 = vector.shape_cast %11 : vector<16x16x4xbf16> to vector<256x4xbf16>
    %c1_13 = arith.constant 1 : index
    %c0_14 = arith.constant 0 : index
    %c0_15 = arith.constant 0 : index
    %13 = vector.load %arg3[%c1_13, %c0_14, %c0_15] : memref<9x4x128xbf16, #tpu.memory_space<vmem>>, vector<1x4x128xbf16>
    %14 = vector.shape_cast %13 : vector<1x4x128xbf16> to vector<4x128xbf16>
    %cst_16 = arith.constant dense<0.000000e+00> : vector<256x128xf32>
    %15 = tpu.matmul %12, %14, %cst_16 {dimension_numbers = #tpu.dot_dimension_numbers<[1], [0], [0], [1], [0, 0, 1, 1], [], []>} : vector<256x4xbf16>, vector<4x128xbf16>, vector<256x128xf32> -> vector<256x128xf32>
    %16 = arith.addf %9, %15 : vector<256x128xf32>
    %c0_17 = arith.constant 0 : index
    %c0_18 = arith.constant 0 : index
    %c0_19 = arith.constant 0 : index
    %c2 = arith.constant 2 : index
    %c0_20 = arith.constant 0 : index
    %17 = vector.load %arg2[%c0_17, %c0_18, %c0_19, %c2, %c0_20] : memref<1x1x18x18x4xbf16, #tpu.memory_space<vmem>>, vector<1x1x16x16x4xbf16>
    %18 = vector.shape_cast %17 : vector<1x1x16x16x4xbf16> to vector<16x16x4xbf16>
    %19 = vector.shape_cast %18 : vector<16x16x4xbf16> to vector<256x4xbf16>
    %c2_21 = arith.constant 2 : index
    %c0_22 = arith.constant 0 : index
    %c0_23 = arith.constant 0 : index
    %20 = vector.load %arg3[%c2_21, %c0_22, %c0_23] : memref<9x4x128xbf16, #tpu.memory_space<vmem>>, vector<1x4x128xbf16>
    %21 = vector.shape_cast %20 : vector<1x4x128xbf16> to vector<4x128xbf16>
    %cst_24 = arith.constant dense<0.000000e+00> : vector<256x128xf32>
    %22 = tpu.matmul %19, %21, %cst_24 {dimension_numbers = #tpu.dot_dimension_numbers<[1], [0], [0], [1], [0, 0, 1, 1], [], []>} : vector<256x4xbf16>, vector<4x128xbf16>, vector<256x128xf32> -> vector<256x128xf32>
    %23 = arith.addf %16, %22 : vector<256x128xf32>
    %c0_25 = arith.constant 0 : index
    %c0_26 = arith.constant 0 : index
    %c1_27 = arith.constant 1 : index
    %c0_28 = arith.constant 0 : index
    %c0_29 = arith.constant 0 : index
    %24 = vector.load %arg2[%c0_25, %c0_26, %c1_27, %c0_28, %c0_29] : memref<1x1x18x18x4xbf16, #tpu.memory_space<vmem>>, vector<1x1x16x16x4xbf16>
    %25 = vector.shape_cast %24 : vector<1x1x16x16x4xbf16> to vector<16x16x4xbf16>
    %26 = vector.shape_cast %25 : vector<16x16x4xbf16> to vector<256x4xbf16>
    %c3 = arith.constant 3 : index
    %c0_30 = arith.constant 0 : index
    %c0_31 = arith.constant 0 : index
    %27 = vector.load %arg3[%c3, %c0_30, %c0_31] : memref<9x4x128xbf16, #tpu.memory_space<vmem>>, vector<1x4x128xbf16>
    %28 = vector.shape_cast %27 : vector<1x4x128xbf16> to vector<4x128xbf16>
    %cst_32 = arith.constant dense<0.000000e+00> : vector<256x128xf32>
    %29 = tpu.matmul %26, %28, %cst_32 {dimension_numbers = #tpu.dot_dimension_numbers<[1], [0], [0], [1], [0, 0, 1, 1], [], []>} : vector<256x4xbf16>, vector<4x128xbf16>, vector<256x128xf32> -> vector<256x128xf32>
    %30 = arith.addf %23, %29 : vector<256x128xf32>
    %c0_33 = arith.constant 0 : index
    %c0_34 = arith.constant 0 : index
    %c1_35 = arith.constant 1 : index
    %c1_36 = arith.constant 1 : index
    %c0_37 = arith.constant 0 : index
    %31 = vector.load %arg2[%c0_33, %c0_34, %c1_35, %c1_36, %c0_37] : memref<1x1x18x18x4xbf16, #tpu.memory_space<vmem>>, vector<1x1x16x16x4xbf16>
    %32 = vector.shape_cast %31 : vector<1x1x16x16x4xbf16> to vector<16x16x4xbf16>
    %33 = vector.shape_cast %32 : vector<16x16x4xbf16> to vector<256x4xbf16>
    %c4 = arith.constant 4 : index
    %c0_38 = arith.constant 0 : index
    %c0_39 = arith.constant 0 : index
    %34 = vector.load %arg3[%c4, %c0_38, %c0_39] : memref<9x4x128xbf16, #tpu.memory_space<vmem>>, vector<1x4x128xbf16>
    %35 = vector.shape_cast %34 : vector<1x4x128xbf16> to vector<4x128xbf16>
    %cst_40 = arith.constant dense<0.000000e+00> : vector<256x128xf32>
    %36 = tpu.matmul %33, %35, %cst_40 {dimension_numbers = #tpu.dot_dimension_numbers<[1], [0], [0], [1], [0, 0, 1, 1], [], []>} : vector<256x4xbf16>, vector<4x128xbf16>, vector<256x128xf32> -> vector<256x128xf32>
    %37 = arith.addf %30, %36 : vector<256x128xf32>
    %c0_41 = arith.constant 0 : index
    %c0_42 = arith.constant 0 : index
    %c1_43 = arith.constant 1 : index
    %c2_44 = arith.constant 2 : index
    %c0_45 = arith.constant 0 : index
    %38 = vector.load %arg2[%c0_41, %c0_42, %c1_43, %c2_44, %c0_45] : memref<1x1x18x18x4xbf16, #tpu.memory_space<vmem>>, vector<1x1x16x16x4xbf16>
    %39 = vector.shape_cast %38 : vector<1x1x16x16x4xbf16> to vector<16x16x4xbf16>
    %40 = vector.shape_cast %39 : vector<16x16x4xbf16> to vector<256x4xbf16>
    %c5 = arith.constant 5 : index
    %c0_46 = arith.constant 0 : index
    %c0_47 = arith.constant 0 : index
    %41 = vector.load %arg3[%c5, %c0_46, %c0_47] : memref<9x4x128xbf16, #tpu.memory_space<vmem>>, vector<1x4x128xbf16>
    %42 = vector.shape_cast %41 : vector<1x4x128xbf16> to vector<4x128xbf16>
    %cst_48 = arith.constant dense<0.000000e+00> : vector<256x128xf32>
    %43 = tpu.matmul %40, %42, %cst_48 {dimension_numbers = #tpu.dot_dimension_numbers<[1], [0], [0], [1], [0, 0, 1, 1], [], []>} : vector<256x4xbf16>, vector<4x128xbf16>, vector<256x128xf32> -> vector<256x128xf32>
    %44 = arith.addf %37, %43 : vector<256x128xf32>
    %c0_49 = arith.constant 0 : index
    %c0_50 = arith.constant 0 : index
    %c2_51 = arith.constant 2 : index
    %c0_52 = arith.constant 0 : index
    %c0_53 = arith.constant 0 : index
    %45 = vector.load %arg2[%c0_49, %c0_50, %c2_51, %c0_52, %c0_53] : memref<1x1x18x18x4xbf16, #tpu.memory_space<vmem>>, vector<1x1x16x16x4xbf16>
    %46 = vector.shape_cast %45 : vector<1x1x16x16x4xbf16> to vector<16x16x4xbf16>
    %47 = vector.shape_cast %46 : vector<16x16x4xbf16> to vector<256x4xbf16>
    %c6 = arith.constant 6 : index
    %c0_54 = arith.constant 0 : index
    %c0_55 = arith.constant 0 : index
    %48 = vector.load %arg3[%c6, %c0_54, %c0_55] : memref<9x4x128xbf16, #tpu.memory_space<vmem>>, vector<1x4x128xbf16>
    %49 = vector.shape_cast %48 : vector<1x4x128xbf16> to vector<4x128xbf16>
    %cst_56 = arith.constant dense<0.000000e+00> : vector<256x128xf32>
    %50 = tpu.matmul %47, %49, %cst_56 {dimension_numbers = #tpu.dot_dimension_numbers<[1], [0], [0], [1], [0, 0, 1, 1], [], []>} : vector<256x4xbf16>, vector<4x128xbf16>, vector<256x128xf32> -> vector<256x128xf32>
    %51 = arith.addf %44, %50 : vector<256x128xf32>
    %c0_57 = arith.constant 0 : index
    %c0_58 = arith.constant 0 : index
    %c2_59 = arith.constant 2 : index
    %c1_60 = arith.constant 1 : index
    %c0_61 = arith.constant 0 : index
    %52 = vector.load %arg2[%c0_57, %c0_58, %c2_59, %c1_60, %c0_61] : memref<1x1x18x18x4xbf16, #tpu.memory_space<vmem>>, vector<1x1x16x16x4xbf16>
    %53 = vector.shape_cast %52 : vector<1x1x16x16x4xbf16> to vector<16x16x4xbf16>
    %54 = vector.shape_cast %53 : vector<16x16x4xbf16> to vector<256x4xbf16>
    %c7 = arith.constant 7 : index
    %c0_62 = arith.constant 0 : index
    %c0_63 = arith.constant 0 : index
    %55 = vector.load %arg3[%c7, %c0_62, %c0_63] : memref<9x4x128xbf16, #tpu.memory_space<vmem>>, vector<1x4x128xbf16>
    %56 = vector.shape_cast %55 : vector<1x4x128xbf16> to vector<4x128xbf16>
    %cst_64 = arith.constant dense<0.000000e+00> : vector<256x128xf32>
    %57 = tpu.matmul %54, %56, %cst_64 {dimension_numbers = #tpu.dot_dimension_numbers<[1], [0], [0], [1], [0, 0, 1, 1], [], []>} : vector<256x4xbf16>, vector<4x128xbf16>, vector<256x128xf32> -> vector<256x128xf32>
    %58 = arith.addf %51, %57 : vector<256x128xf32>
    %c0_65 = arith.constant 0 : index
    %c0_66 = arith.constant 0 : index
    %c2_67 = arith.constant 2 : index
    %c2_68 = arith.constant 2 : index
    %c0_69 = arith.constant 0 : index
    %59 = vector.load %arg2[%c0_65, %c0_66, %c2_67, %c2_68, %c0_69] : memref<1x1x18x18x4xbf16, #tpu.memory_space<vmem>>, vector<1x1x16x16x4xbf16>
    %60 = vector.shape_cast %59 : vector<1x1x16x16x4xbf16> to vector<16x16x4xbf16>
    %61 = vector.shape_cast %60 : vector<16x16x4xbf16> to vector<256x4xbf16>
    %c8 = arith.constant 8 : index
    %c0_70 = arith.constant 0 : index
    %c0_71 = arith.constant 0 : index
    %62 = vector.load %arg3[%c8, %c0_70, %c0_71] : memref<9x4x128xbf16, #tpu.memory_space<vmem>>, vector<1x4x128xbf16>
    %63 = vector.shape_cast %62 : vector<1x4x128xbf16> to vector<4x128xbf16>
    %cst_72 = arith.constant dense<0.000000e+00> : vector<256x128xf32>
    %64 = tpu.matmul %61, %63, %cst_72 {dimension_numbers = #tpu.dot_dimension_numbers<[1], [0], [0], [1], [0, 0, 1, 1], [], []>} : vector<256x4xbf16>, vector<4x128xbf16>, vector<256x128xf32> -> vector<256x128xf32>
    %65 = arith.addf %58, %64 : vector<256x128xf32>
    %66 = tpu.transpose %65, [1, 0] : vector<256x128xf32> -> vector<128x256xf32>
    %67 = vector.extract_strided_slice %66 {offsets = [0, 0], sizes = [8, 256], strides = [1, 1]} : vector<128x256xf32> to vector<8x256xf32>
    %c0_73 = arith.constant 0 : index
    %c0_74 = arith.constant 0 : index
    %c0_75 = arith.constant 0 : index
    %c0_76 = arith.constant 0 : index
    %68 = vector.load %arg5[%c0_73, %c0_74, %c0_75, %c0_76] : memref<1x1x8x256xf32, #tpu.memory_space<vmem>>, vector<1x1x8x256xf32>
    %69 = vector.shape_cast %68 : vector<1x1x8x256xf32> to vector<8x256xf32>
    %70 = vector.shape_cast %67 : vector<8x256xf32> to vector<1x1x8x256xf32>
    tpu.vector_store %arg5[%c0_73, %c0_74, %c0_75, %c0_76], %70 {strides = array<i32>} : memref<1x1x8x256xf32, #tpu.memory_space<vmem>>, vector<1x1x8x256xf32>,
    return
  }
  func.func @transform_0(%arg0: i32, %arg1: i32) -> (i32, i32, i32, i32, i32) {
    %c0_i32 = arith.constant 0 : i32
    %c0_i32_0 = arith.constant 0 : i32
    %c0_i32_1 = arith.constant 0 : i32
    %c0_i32_2 = arith.constant 0 : i32
    return %arg0, %arg1, %c0_i32, %c0_i32_0, %c0_i32_1 : i32, i32, i32, i32, i32
  }
  func.func @transform_1(%arg0: i32, %arg1: i32) -> (i32, i32, i32) {
    %c0_i32 = arith.constant 0 : i32
    %c0_i32_0 = arith.constant 0 : i32
    %c0_i32_1 = arith.constant 0 : i32
    %c0_i32_2 = arith.constant 0 : i32
    return %c0_i32, %c0_i32_0, %c0_i32_1 : i32, i32, i32
  }
  func.func @transform_2(%arg0: i32, %arg1: i32) -> (i32, i32) {
    %c0_i32 = arith.constant 0 : i32
    %c0_i32_0 = arith.constant 0 : i32
    %c0_i32_1 = arith.constant 0 : i32
    return %c0_i32, %c0_i32_0 : i32, i32
  }
  func.func @transform_3(%arg0: i32, %arg1: i32) -> (i32, i32, i32, i32) {
    %c0_i32 = arith.constant 0 : i32
    %c0_i32_0 = arith.constant 0 : i32
    %c0_i32_1 = arith.constant 0 : i32
    return %arg0, %arg1, %c0_i32, %c0_i32_0 : i32, i32, i32, i32
  }
}

</mosaic_0001>

<bundles_post_ra>
// kernel: tpu_custom_call.1
= control target key start
LH: loop header
LB: loop body
LE: loop exit
PB: predicated region body
PF: predicated region fallthrough
CT: control target
= control target key end

     0   :  { %8 = vsyncpa [#allocation3], 0  ;;  %s8292_s0 = inlined_call_operand.vmem [shape: bf16[2,1,18,18,4], index: 0, kind: input, shape index: {}]   ;;  %s8293_s1 = inlined_call_operand.vmem [shape: bf16[9,4,128], index: 1, kind: input, shape index: {}]   ;;  %s8294_s2 = inlined_call_operand.vmem [shape: f32[1,128], index: 2, kind: input, shape index: {}]   ;;  %s8295_s3 = inlined_call_operand.hbm [shape: f32[2,1,8,256], index: 3, kind: output, shape index: {}]  }
   0x1   :  { %10 = vsyncpa [#allocation3 + $0x1], 0  ;;  %s6568_s12 = smov 0   ;;  %s6570_s13 = smov 0  }
   0x2   :  { %s6572_s14 = smov 0   ;;  %s6574_s15 = smov 0  }
   0x3   :  { %s6576_s16 = smov 0   ;;  %s6578_s17 = smov 0  }
   0x4 LB: > { %s5038_s18 = sadd.s32 4294967295, %s6545_s17   ;;  %s5039_s19 = sadd.s32 4294967294, %s6545_s17   ;;  %s6545_s17 = sphi %s6578_s17, %s16_s17   ;;  %s6541_s16 = sphi %s6576_s16, %s8308_s16   ;;  %s6537_s15 = sphi %s6574_s15, %s8307_s15   ;;  %s6533_s14 = sphi %s6572_s14, %s8306_s14   ;;  %s6529_s13 = sphi %s6570_s13, %s8305_s13   ;;  %s6525_s12 = sphi %s6568_s12, %s8304_s12  }
   0x5   : > { %s28_s20 = sadd.s32 1, %s6541_s16  ;;  %s107_s21 = sadd.s32 1, %s6533_s14 }
   0x6   : > { %p30_p0 = scmp.ge.s32.totalorder %s28_s20, 2  ;;  %p117_p1 = scmp.ne.s32.totalorder %s6533_s14, %s6529_s13 }
   0x7   : > { %p118_p2 = scmp.eq.s32.totalorder %s5038_s18, 1  ;;  %p123_p3 = scmp.ne.s32.totalorder %s6529_s13, %s6525_s12 }
   0x8   : > { %s8310_s20 = smov (%p30_p0, %s28_s20), 0  ;;  %p124_p5 = scmp.eq.s32.totalorder %s5039_s19, 1 }
   0x9   : > { %p6608_p4 = por %p118_p2, %p117_p1  ;;  %s102_s23 = ssub.s32 %s6541_s16, %s8310_s20 }
   0xa   : > { %p5042_p6 = scmp.ge.s32.totalorder %s6545_s17, 1  ;;  %p105_p7 = scmp.eq.s32.totalorder %s102_s23, 0 }
   0xb   : > { %p6615_p8 = por %p124_p5, %p123_p3  ;;  %p160_p9 = scmp.lt.s32.totalorder %s6545_s17, 3 }
   0xc   : > { %s6621_s25 = scalar_select %p105_p7, %s6533_s14, %s107_s21  }
   0xd   : > { %p161_p10 = pnand %p5042_p6, %p160_p9 }
   0xe   : > { %v237_v0 = vld [vmem:[%s8293_s1] sm:$0x3] (!%p161_p10)  ;;  %vm367_vm0 = vcmask (!%p161_p10), 1041408   ;;  %p188_p11 = scmp.lt.s32.totalorder (!%p161_p10), %s6537_s15, 1  ;;  %v5273_v2 = vld [vmem:[%s8293_s1 + $0x8] sm:$0x3] (!%p161_p10) }
   0xf   : > { %164 = sbr.rel (%p161_p10) target bundleno = 664 (0x298), region = 32  ;;  %6337 = vmatprep.subr.msk.bf16.mxu1 (!%p161_p10), %vm367_vm0, %v237_v0  ;;  %v369_v1 = vsel (!%p161_p10), %vm367_vm0, %v237_v0, 0  ;;  %v5078_v3 = vld [vmem:[%s8293_s1 + $0x2] sm:$0x3] (!%p161_p10)  ;;  %6341 = vmatprep.subr.msk.bf16.mxu0 (!%p161_p10), %vm367_vm0, %v5273_v2  ;;  %v6638_v4 = vsel (!%p161_p10), %vm367_vm0, %v5273_v2, 0  ;;  %vm318_vm1 = vcmask (!%p161_p10), 31744  }
  0x10   : > { %5742 = vmatpush3.bf16.msra.mxu1 (!%p161_p10), %v369_v1  ;;  %5878 = vmatpush3.bf16.msra.mxu0 (!%p161_p10), %v6638_v4  ;;  %v5338_v5 = vld [vmem:[%s8293_s1 + $0xa] sm:$0x3] (!%p161_p10)  ;;  %vm612_vm2 = vsmask.f32 (!%p161_p10), 3328  ;;  %vm613_vm3 = vsmask.f32 (!%p161_p10), 7440 }
  0x11   : > { %6338 = vmatprep.subr.msk.bf16.mxu1 (!%p161_p10), %vm367_vm0, %v5078_v3  ;;  %6343 = vmatprep.subr.msk.bf16.mxu0 (!%p161_p10), %vm367_vm0, %v5338_v5  ;;  %v6654_v6 = vld [vmem:[%s8293_s1 + $0xc] sm:$0x3] (!%p161_p10)  ;;  %v5127_v8 = vld [vmem:[%s8293_s1 + $0x4] sm:$0x3] (!%p161_p10)  ;;  %v1098_v10 = vsel (!%p161_p10), %vm367_vm0, %v5078_v3, 0  ;;  %v6666_v12 = vsel (!%p161_p10), %vm367_vm0, %v5338_v5, 0  ;;  %vm6706_vm4 = vmor (!%p161_p10), %vm612_vm2, %vm613_vm3 }
  0x12   : > { %v6670_v13 = vsel (!%p161_p10), %vm367_vm0, %v6654_v6, 0  ;;  %v6687_v22 = vld [vmem:[%s8293_s1 + $0xe] sm:$0x3] (!%p161_p10)  ;;  %v6695_v27 = vsel (!%p161_p10), %vm367_vm0, %v5127_v8, 0  ;;  %vm1357_vm5 = vcmask (!%p161_p10), 1042432   ;;  %vm1358_vm6 = vcmask (!%p161_p10), 1046532  }
  0x13   : > { %v6713_v46 = vsel (!%p161_p10), %vm367_vm0, %v6687_v22, 0  ;;  %vm6833_vm7 = vmor (!%p161_p10), %vm1357_vm5, %vm1358_vm6  ;;  %s185_s9 = sand.u32 (!%p161_p10), 1, %s6529_s13   ;;  %s5587_s19 = sshll.u32 (!%p161_p10), %s6537_s15, 8 }
  0x14   : > { %s5043_s10 = sshll.u32 (!%p161_p10), %s185_s9, 4  ;;  %s8247_s26 = scalar_lea.hbm (!%p161_p10), %s8295_s3, %s5587_s19 }
  0x15   : > { %s4943_s27 = scalar_lea.sflag (!%p161_p10), [#allocation3], %s185_s9  ;;  %s6547_s29 = smov (!%p161_p10), [#allocation2]  }
  0x16   : > { %s189_s5 = scalar_select %p188_p11, %s6537_s15, 1 }
  0x17   : > { %s6471_s15 = sshll.u32 %s6547_s29, 4  ;;  %s6472_s15 = int_to_ptr.vmem [resolvable:$false] %s6471_s15 }
  0x18   : > { %s6347_s8 = smul.u32 216, %s189_s5  ;;  %s6473_s30 = scalar_lea.vmem %s6472_s15, 512 }
  0x1a   : > { %s6649_s11 = scalar_lea.vmem %s8292_s0, %s6347_s8 }
  0x1b   : > { %v6403_v7 = vld [vmem:[%s6649_s11] sm:$0xff]   ;;  %v6404_v9 = vld [vmem:[%s6649_s11 + $0xc] sm:$0xff]   ;;  %v6405_v11 = vld [vmem:[%s6649_s11 + $0x18] sm:$0xff]  }
  0x1c   : > { %5743 = vmatprep.mubr.msk.bf16.mxu1 %vm318_vm1, %v6403_v7  ;;  %v5225_v14 = vld [vmem:[%s6649_s11 + $0xc] sm:$0xf]  ;;  %v6675_v15 = vld [vmem:[%s6649_s11 + $0x10] sm:$0xf]  ;;  %v6678_v16 = vld [vmem:[%s6649_s11 + $0x14] sm:$0x1] }
  0x1d   : > { %5744 = vmatmul.mubr.msk.bf16.vlgmr.msra.gmra.mrb[0].mxu1 %vm318_vm1, %v6404_v9  ;;  %v2174_v17 = vshrl.u32 %v5225_v14, 16  ;;  %v2177_v18 = vshll.u32 %v5225_v14, 16  ;;  %v2183_v19 = vshll.u32 %v6675_v15, 16  ;;  %v2187_v20 = vshrl.u32 %v6675_v15, 16  ;;  %v5228_v21 = vld [vmem:[%s6649_s11 + $0x18] sm:$0xf] }
  0x1e   : > { %5747 = vmatprep.mubr.msk.bf16.mxu1 %vm318_vm1, %v6405_v11  ;;  %5776 = vmatpush3.bf16.msra.mxu1 %v1098_v10  ;;  %v6406_v23 = vld [vmem:[%s6649_s11 + $0x24] sm:$0xff]   ;;  %v2193_v24 = vshll.u32 %v6678_v16, 16  ;;  %v6692_v25 = vld [vmem:[%s6649_s11 + $0x1c] sm:$0xf]  ;;  %v2198_v26 = vshrl.u32 %v5228_v21, 16  ;;  %v2201_v35 = vshll.u32 %v5228_v21, 16 }
  0x1f   : > { %6339 = vmatprep.subr.msk.bf16.mxu1 %vm367_vm0, %v5127_v8  ;;  %v2176_v28 = vrot.slane %v2174_v17, 4  ;;  %v2179_v29 = vrot.slane %v2177_v18, 5  ;;  %v2185_v30 = vrot.slane %v2183_v19, 5  ;;  %v2189_v31 = vrot.slane %v2187_v20, 4  ;;  %v6698_v32 = vld [vmem:[%s6649_s11 + $0x20] sm:$0x1] }
  0x20   : > { %v2195_v33 = vrot.slane %v2193_v24, 5  ;;  %v2200_v34 = vrot.slane %v2198_v26, 4  ;;  %v2207_v36 = vshll.u32 %v6692_v25, 16  ;;  %v2211_v39 = vshrl.u32 %v6692_v25, 16  ;;  %v6407_v41 = vld [vmem:[%s6649_s11 + $0x30] sm:$0xff]   ;;  %v6408_v0 = vld [vmem:[%s6649_s11 + $0x3c] sm:$0xff]  }
  0x21   : > { %v2180_v37 = vor.u32 %v2179_v29, %v2176_v28  ;;  %v2190_v38 = vor.u32 %v2189_v31, %v2185_v30  ;;  %v2217_v40 = vshll.u32 %v6698_v32, 16  ;;  %v2917_v43 = vrot.slane %v6675_v15, 5  ;;  %v5231_v54 = vld [vmem:[%s6649_s11 + $0x24] sm:$0xf]  ;;  %v6721_v55 = vld [vmem:[%s6649_s11 + $0x28] sm:$0xf] }
  0x22   : > { %v2203_v44 = vrot.slane %v2201_v35, 5  ;;  %v2209_v45 = vrot.slane %v2207_v36, 5  ;;  %v2920_v49 = vrot.slane %v6678_v16, 5  ;;  %v2213_v50 = vrot.slane %v2211_v39, 4  ;;  %v6728_v59 = vld [vmem:[%s6649_s11 + $0x2c] sm:$0x1] }
  0x23   : > { %v2181_v47 = vrot.slane %v2180_v37, 4  ;;  %v2191_v48 = vrot.slane %v2190_v38, 4  ;;  %v2219_v52 = vrot.slane %v2217_v40, 5  ;;  %v2924_v53 = vrot.slane %v6692_v25, 5  ;;  %v5234_v61 = vld [vmem:[%s6649_s11 + $0x30] sm:$0xf] }
  0x24   : > { %v2204_v51 = vor.u32 %v2203_v44, %v2200_v34  ;;  %v2214_v58 = vor.u32 %v2213_v50, %v2209_v45  ;;  %v2222_v60 = vshrl.u32 %v5231_v54, 16  ;;  %v2225_v1 = vshll.u32 %v5231_v54, 16  ;;  %v6734_v3 = vld [vmem:[%s6649_s11 + $0x34] sm:$0xf]  ;;  %v6739_v10 = vld [vmem:[%s6649_s11 + $0x38] sm:$0x1] }
  0x25   : > { %5748 = vmatmul.mubr.msk.bf16.gmra.mrb[4].mxu1 %vm318_vm1, %v6406_v23  ;;  %v2186_v56 = vsel %vm6706_vm4, %v2181_v47, %v2185_v30  ;;  %v2196_v57 = vsel %vm6706_vm4, %v2191_v48, %v2195_v33  ;;  %v2231_v2 = vshll.u32 %v6721_v55, 16  ;;  %v2235_v8 = vshrl.u32 %v6721_v55, 16  ;;  %v6409_v19 = vld [vmem:[%s6649_s11 + $0x48] sm:$0xff]   ;;  %v5237_v36 = vld [vmem:[%s6649_s11 + $0x3c] sm:$0xf] }
  0x26   : > { %5751 = vmatprep.mubr.msk.bf16.mxu1 %vm318_vm1, %v6407_v41  ;;  %v5274_v62 = vcombine.low %v2186_v56, %v2196_v57  ;;  %v2205_v63 = vrot.slane %v2204_v51, 4  ;;  %v2215_v5 = vrot.slane %v2214_v58, 4  ;;  %v2224_v7 = vrot.slane %v2222_v60, 4  ;;  %v6760_v41 = vld [vmem:[%s6649_s11 + $0x40] sm:$0xf] }
  0x27   : > { %v2241_v9 = vshll.u32 %v6728_v59, 16  ;;  %v2227_v14 = vrot.slane %v2225_v1, 5  ;;  %v2233_v17 = vrot.slane %v2231_v2, 5  ;;  %v2246_v18 = vshrl.u32 %v5234_v61, 16  ;;  %v6764_v50 = vld [vmem:[%s6649_s11 + $0x44] sm:$0x1] }
  0x28   : > { %5879 = vmatprep.mubr.msk.bf16.mxu0 %vm318_vm1, %v5274_v62  ;;  %v2210_v11 = vsel %vm6706_vm4, %v2205_v63, %v2209_v45  ;;  %v2220_v20 = vsel %vm6706_vm4, %v2215_v5, %v2219_v52  ;;  %v2237_v21 = vrot.slane %v2235_v8, 4  ;;  %v2249_v24 = vshll.u32 %v5234_v61, 16  ;;  %v6410_v52 = vld [vmem:[%s6649_s11 + $0x54] sm:$0xff]   ;;  %v5240_v58 = vld [vmem:[%s6649_s11 + $0x48] sm:$0xf]  ;;  %v6411_v8 = vld [vmem:[%s6649_s11 + $0x60] sm:$0xff]  }
  0x29   : > { %v2243_v23 = vrot.slane %v2241_v9, 5  ;;  %v5275_v26 = vcombine.low %v2210_v11, %v2220_v20  ;;  %v2228_v28 = vor.u32 %v2227_v14, %v2224_v7  ;;  %v2248_v29 = vrot.slane %v2246_v18, 4  ;;  %v6777_v63 = vld [vmem:[%s6649_s11 + $0x4c] sm:$0xf]  ;;  %v6780_v7 = vld [vmem:[%s6649_s11 + $0x50] sm:$0x1] }
  0x2a   : > { %v2255_v30 = vshll.u32 %v6734_v3, 16  ;;  %v2238_v31 = vor.u32 %v2237_v21, %v2233_v17  ;;  %v2251_v33 = vrot.slane %v2249_v24, 5  ;;  %v2259_v34 = vshrl.u32 %v6734_v3, 16 }
  0x2b   : > { %v2265_v35 = vshll.u32 %v6739_v10, 16  ;;  %5880 = vmatmul.mubr.msk.bf16.vlgmr.msra.gmra.mrb[0].mxu0 %vm318_vm1, %v5275_v26  ;;  %v6755_v37 = vrot.slane %v2924_v53, 4  ;;  %v2927_v38 = vrot.slane %v6698_v32, 5  ;;  %v2229_v39 = vrot.slane %v2228_v28, 4  ;;  %v5243_v28 = vld [vmem:[%s6649_s11 + $0x54] sm:$0xf] }
  0x2c   : > { %v2257_v40 = vrot.slane %v2255_v30, 5  ;;  %5912 = vmatpush3.bf16.msra.mxu0 %v6666_v12  ;;  %v2239_v44 = vrot.slane %v2238_v31, 4  ;;  %v2252_v45 = vor.u32 %v2251_v33, %v2248_v29  ;;  %v2261_v47 = vrot.slane %v2259_v34, 4  ;;  %v6795_v34 = vld [vmem:[%s6649_s11 + $0x58] sm:$0xf] }
  0x2d   : > { %5752 = vmatmul.mubr.msk.bf16.gmra.mrb[8].mxu1 %vm318_vm1, %v6408_v0  ;;  %v2267_v48 = vrot.slane %v2265_v35, 5  ;;  %v2234_v51 = vsel %vm6706_vm4, %v2229_v39, %v2233_v17  ;;  %v2270_v54 = vshrl.u32 %v5237_v36, 16  ;;  %v2273_v56 = vshll.u32 %v5237_v36, 16  ;;  %6344 = vmatprep.subr.msk.bf16.mxu0 %vm367_vm0, %v6654_v6 }
  0x2e   : > { %5755 = vmatprep.mubr.msk.bf16.mxu1 %vm318_vm1, %v6409_v19  ;;  %v2279_v57 = vshll.u32 %v6760_v41, 16  ;;  %v2244_v12 = vsel %vm6706_vm4, %v2239_v44, %v2243_v23  ;;  %v2253_v60 = vrot.slane %v2252_v45, 4  ;;  %v2262_v61 = vor.u32 %v2261_v47, %v2257_v40  ;;  %v6412_v44 = vld [vmem:[%s6649_s11 + $0x6c] sm:$0xff]   ;;  %v6800_v45 = vld [vmem:[%s6649_s11 + $0x5c] sm:$0x1] }
  0x2f   : > { %v2283_v62 = vshrl.u32 %v6760_v41, 16  ;;  %v5276_v0 = vcombine.low %v2234_v51, %v2244_v12  ;;  %v2272_v1 = vrot.slane %v2270_v54, 4  ;;  %v2275_v2 = vrot.slane %v2273_v56, 5  ;;  %v5246_v54 = vld [vmem:[%s6649_s11 + $0x60] sm:$0xf] }
  0x30   : > { %v2281_v5 = vrot.slane %v2279_v57, 5  ;;  %v2258_v9 = vsel %vm6706_vm4, %v2253_v60, %v2257_v40  ;;  %v2263_v6 = vrot.slane %v2262_v61, 4  ;;  %v2289_v14 = vshll.u32 %v6764_v50, 16  ;;  %v6807_v56 = vld [vmem:[%s6649_s11 + $0x64] sm:$0xf] }
  0x31   : > { %v2285_v11 = vrot.slane %v2283_v62, 4  ;;  %5883 = vmatprep.mubr.msk.bf16.mxu0 %vm318_vm1, %v5276_v0  ;;  %v2276_v17 = vor.u32 %v2275_v2, %v2272_v1  ;;  %v2294_v18 = vshrl.u32 %v5240_v58, 16  ;;  %v2297_v19 = vshll.u32 %v5240_v58, 16  ;;  %v6813_v2 = vld [vmem:[%s6649_s11 + $0x68] sm:$0x1] }
  0x32   : > { %v2303_v20 = vshll.u32 %v6777_v63, 16  ;;  %v2268_v21 = vsel %vm6706_vm4, %v2263_v6, %v2267_v48  ;;  %v2291_v24 = vrot.slane %v2289_v14, 5  ;;  %v2307_v26 = vshrl.u32 %v6777_v63, 16 }
  0x33   : > { %v2286_v23 = vor.u32 %v2285_v11, %v2281_v5  ;;  %v5277_v29 = vcombine.low %v2258_v9, %v2268_v21  ;;  %v2277_v30 = vrot.slane %v2276_v17, 4  ;;  %v2296_v31 = vrot.slane %v2294_v18, 4  ;;  %v5307_v21 = vld [vmem:[%s6649_s11 + $0x18] sm:$0xe] }
  0x34   : > { %v2299_v33 = vrot.slane %v2297_v19, 5  ;;  %v2305_v36 = vrot.slane %v2303_v20, 5  ;;  %v2309_v39 = vrot.slane %v2307_v26, 4  ;;  %v2313_v40 = vshll.u32 %v6780_v7, 16  ;;  %v5306_v20 = vld [vmem:[%s6649_s11 + $0xc] sm:$0xe] }
  0x35   : > { %5756 = vmatmul.mubr.msk.bf16.gmra.mrb[12].mxu1 %vm318_vm1, %v6410_v52  ;;  %v2287_v35 = vrot.slane %v2286_v23, 4  ;;  %5884 = vmatmul.mubr.msk.bf16.gmra.mrb[4].mxu0 %vm318_vm1, %v5277_v29  ;;  %v2282_v47 = vsel %vm6706_vm4, %v2277_v30, %v2281_v5  ;;  %v2318_v51 = vshrl.u32 %v5243_v28, 16  ;;  %v2321_v52 = vshll.u32 %v5243_v28, 16  ;;  %v6413_v5 = vld [vmem:[%s6649_s11 + $0x78] sm:$0xff]  }
  0x36   : > { %5759 = vmatprep.mubr.msk.bf16.mxu1 %vm318_vm1, %v6411_v8  ;;  %v2300_v48 = vor.u32 %v2299_v33, %v2296_v31  ;;  %v2310_v58 = vor.u32 %v2309_v39, %v2305_v36  ;;  %v2315_v12 = vrot.slane %v2313_v40, 5  ;;  %v2327_v60 = vshll.u32 %v6795_v34, 16 }
  0x37   : > { %v2292_v57 = vsel %vm6706_vm4, %v2287_v35, %v2291_v24  ;;  %v2320_v0 = vrot.slane %v2318_v51, 4  ;;  %v2323_v1 = vrot.slane %v2321_v52, 5  ;;  %v2331_v6 = vshrl.u32 %v6795_v34, 16 }
  0x38   : > { %v5278_v61 = vcombine.low %v2282_v47, %v2292_v57  ;;  %v2301_v62 = vrot.slane %v2300_v48, 4  ;;  %v2311_v8 = vrot.slane %v2310_v58, 4  ;;  %v2329_v9 = vrot.slane %v2327_v60, 5  ;;  %v6415_v57 = vld [vmem:[%s6649_s11 + $0x90] sm:$0xff]   ;;  %v5308_v58 = vld [vmem:[%s6649_s11 + $0x24] sm:$0xe] }
  0x39   : > { %v2337_v11 = vshll.u32 %v6800_v45, 16  ;;  %v2324_v17 = vor.u32 %v2323_v1, %v2320_v0  ;;  %v2342_v18 = vshrl.u32 %v5246_v54, 16  ;;  %v2345_v19 = vshll.u32 %v5246_v54, 16  ;;  %v5309_v0 = vld [vmem:[%s6649_s11 + $0x30] sm:$0xe] }
  0x3a   : > { %5887 = vmatprep.mubr.msk.bf16.mxu0 %vm318_vm1, %v5278_v61  ;;  %v2306_v14 = vsel %vm6706_vm4, %v2301_v62, %v2305_v36  ;;  %v2316_v23 = vsel %vm6706_vm4, %v2311_v8, %v2315_v12  ;;  %v2333_v24 = vrot.slane %v2331_v6, 4  ;;  %v2351_v28 = vshll.u32 %v6807_v56, 16 }
  0x3b   : > { %v2339_v26 = vrot.slane %v2337_v11, 5  ;;  %v5279_v29 = vcombine.low %v2306_v14, %v2316_v23  ;;  %v2325_v30 = vrot.slane %v2324_v17, 4  ;;  %v2344_v31 = vrot.slane %v2342_v18, 4  ;;  %v5310_v14 = vld [vmem:[%s6649_s11 + $0x3c] sm:$0xe] }
  0x3c   : > { %v2347_v33 = vrot.slane %v2345_v19, 5  ;;  %v2334_v35 = vor.u32 %v2333_v24, %v2329_v9  ;;  %v2353_v36 = vrot.slane %v2351_v28, 5  ;;  %v2355_v39 = vshrl.u32 %v6807_v56, 16  ;;  %v564_v24 = vld [vmem:[%s6649_s11] sm:$0xf] }
  0x3d   : > { %5760 = vmatmul.mubr.msk.bf16.gmra.mrb[16].mxu1 %vm318_vm1, %v6412_v44  ;;  %v2361_v40 = vshll.u32 %v6813_v2, 16  ;;  %v6414_v44 = vld [vmem:[%s6649_s11 + $0x84] sm:$0xff]   ;;  %5888 = vmatmul.mubr.msk.bf16.gmra.mrb[8].mxu0 %vm318_vm1, %v5279_v29  ;;  %v2330_v48 = vsel %vm6706_vm4, %v2325_v30, %v2329_v9  ;;  %v5322_v52 = vrot.slane %v5306_v20, 9  ;;  %v2919_v54 = vrot.slane %v2917_v43, 4 }
  0x3e   : > { %5763 = vmatprep.mubr.msk.bf16.mxu1 %vm318_vm1, %v6413_v5  ;;  %v2348_v51 = vor.u32 %v2347_v33, %v2344_v31  ;;  %v2335_v12 = vrot.slane %v2334_v35, 4  ;;  %v2357_v60 = vrot.slane %v2355_v39, 4  ;;  %v5323_v62 = vrot.slane %v5307_v21, 9  ;;  %v5311_v20 = vld [vmem:[%s6649_s11 + $0x48] sm:$0xe]  ;;  %v6416_v31 = vld [vmem:[%s6649_s11 + $0x9c] sm:$0xff]  }
  0x3f   : > { %v2363_v61 = vrot.slane %v2361_v40, 5  ;;  %v6850_v5 = vsel %vm6833_vm7, %v6755_v37, %v2927_v38  ;;  %v5324_v8 = vrot.slane %v5308_v58, 9  ;;  %v2918_v11 = vsel %vm6833_vm7, %v5322_v52, %v2917_v43  ;;  %v565_v30 = vld [vmem:[%s6649_s11 + $0x4] sm:$0xf]  ;;  %v6417_v35 = vld [vmem:[%s6649_s11 + $0xa8] sm:$0xff]  }
  0x40   : > { %v2349_v1 = vrot.slane %v2348_v51, 4  ;;  %v2340_v9 = vsel %vm6706_vm4, %v2335_v12, %v2339_v26  ;;  %v2358_v6 = vor.u32 %v2357_v60, %v2353_v36  ;;  %v2921_v32 = vsel %vm6833_vm7, %v2919_v54, %v2920_v49  ;;  %v567_v52 = vld [vmem:[%s6649_s11 + $0xc] sm:$0xf]  ;;  %v6920_v60 = vld [vmem:[%s6649_s11 + $0x10] sm:$0xf] }
  0x41   : > { %v5280_v17 = vcombine.low %v2330_v48, %v2340_v9  ;;  %v6869_v38 = vsel %vm6833_vm7, %v5323_v62, %v2924_v53  ;;  %v2931_v15 = vrot.slane %v6721_v55, 5  ;;  %v2934_v16 = vrot.slane %v6728_v59, 5  ;;  %v6911_v48 = vld [vmem:[%s6649_s11 + $0x8] sm:$0x1] }
  0x42   : > { %v2354_v37 = vsel %vm6706_vm4, %v2349_v1, %v2353_v36  ;;  %v2359_v43 = vrot.slane %v2358_v6, 4  ;;  %v5325_v49 = vrot.slane %v5309_v0, 9  ;;  %v2938_v18 = vrot.slane %v6734_v3, 5 }
  0x43   : > { %5891 = vmatprep.mubr.msk.bf16.mxu0 %vm318_vm1, %v5280_v17  ;;  %v5339_v19 = vcombine.low %v2918_v11, %v2921_v32  ;;  %v2933_v25 = vrot.slane %v2931_v15, 4  ;;  %v2941_v53 = vrot.slane %v6739_v10, 5  ;;  %v5326_v55 = vrot.slane %v5310_v14, 9  ;;  %v6931_v11 = vld [vmem:[%s6649_s11 + $0x14] sm:$0x1] }
  0x44   : > { %v2364_v21 = vsel %vm6706_vm4, %v2359_v43, %v2363_v61  ;;  %v6883_v59 = vsel %vm6833_vm7, %v5324_v8, %v2931_v15  ;;  %v2940_v3 = vrot.slane %v2938_v18, 4  ;;  %v2945_v23 = vrot.slane %v6760_v41, 5  ;;  %v5312_v43 = vld [vmem:[%s6649_s11 + $0x54] sm:$0xe] }
  0x45   : > { %5764 = vmatmul.mubr.msk.bf16.gmra.mrb[20].mxu1 %vm318_vm1, %v6414_v44  ;;  %v5281_v26 = vcombine.low %v2354_v37, %v2364_v21  ;;  %v5340_v28 = vcombine.low %v6869_v38, %v6850_v5  ;;  %v2935_v10 = vsel %vm6833_vm7, %v2933_v25, %v2934_v16  ;;  %v2948_v29 = vrot.slane %v6764_v50, 5  ;;  %v6418_v25 = vld [vmem:[%s6649_s11 + $0xb4] sm:$0xff]  }
  0x46   : > { %5767 = vmatprep.mubr.msk.bf16.mxu1 %vm318_vm1, %v6415_v57  ;;  %v6896_v33 = vsel %vm6833_vm7, %v5325_v49, %v2938_v18  ;;  %v6900_v41 = vsel %vm6833_vm7, %v2940_v3, %v2941_v53  ;;  %v2947_v36 = vrot.slane %v2945_v23, 4  ;;  %v5327_v39 = vrot.slane %v5311_v20, 9 }
  0x47   : > { %5892 = vmatmul.mubr.msk.bf16.gmra.mrb[12].mxu0 %vm318_vm1, %v5281_v26  ;;  %v5341_v40 = vcombine.low %v6883_v59, %v2935_v10  ;;  %v6907_v50 = vsel %vm6833_vm7, %v5326_v55, %v2945_v23  ;;  %v2952_v44 = vrot.slane %v6777_v63, 5  ;;  %v616_v51 = vshrl.u32 %v564_v24, 16  ;;  %v5313_v59 = vld [vmem:[%s6649_s11 + $0x60] sm:$0xe]  ;;  %v570_v10 = vld [vmem:[%s6649_s11 + $0x18] sm:$0xf] }
  0x48   : > { %5913 = vmatprep.mubr.msk.bf16.mxu0 %vm318_vm1, %v5339_v19  ;;  %v6917_v54 = vsel %vm6833_vm7, %v2947_v36, %v2948_v29  ;;  %v619_v57 = vshll.u32 %v564_v24, 16  ;;  %v625_v58 = vshll.u32 %v565_v30, 16  ;;  %v629_v12 = vshrl.u32 %v565_v30, 16 }
  0x49   : > { %v5342_v61 = vcombine.low %v6896_v33, %v6900_v41  ;;  %v2954_v63 = vrot.slane %v2952_v44, 4  ;;  %v2955_v62 = vrot.slane %v6780_v7, 5  ;;  %v618_v0 = vrot.slane %v616_v51, 4  ;;  %v5250_v41 = vld [vmem:[%s6649_s11 + $0x70] sm:$0xf] }
  0x4a   : > { %v621_v1 = vrot.slane %v619_v57, 5  ;;  %v627_v5 = vrot.slane %v625_v58, 5  ;;  %v631_v8 = vrot.slane %v629_v12, 4  ;;  %v635_v9 = vshll.u32 %v6911_v48, 16  ;;  %v6970_v58 = vld [vmem:[%s6649_s11 + $0x20] sm:$0x1] }
  0x4b   : > { %v5343_v6 = vcombine.low %v6907_v50, %v6917_v54  ;;  %v640_v32 = vshrl.u32 %v567_v52, 16  ;;  %v643_v14 = vshll.u32 %v567_v52, 16  ;;  %v649_v7 = vshll.u32 %v6920_v60, 16 }
  0x4c   : > { %v6936_v17 = vsel %vm6833_vm7, %v5327_v39, %v2952_v44  ;;  %v622_v37 = vor.u32 %v621_v1, %v618_v0  ;;  %v632_v38 = vor.u32 %v631_v8, %v627_v5  ;;  %v637_v15 = vrot.slane %v635_v9, 5  ;;  %v573_v1 = vld [vmem:[%s6649_s11 + $0x24] sm:$0xf] }
  0x4d   : > { %5768 = vmatmul.mubr.msk.bf16.gmra.mrb[24].mxu1 %vm318_vm1, %v6416_v31  ;;  %v642_v16 = vrot.slane %v640_v32, 4  ;;  %v645_v49 = vrot.slane %v643_v14, 5  ;;  %v651_v18 = vrot.slane %v649_v7, 5  ;;  %v653_v19 = vshrl.u32 %v6920_v60, 16  ;;  %v6990_v14 = vld [vmem:[%s6649_s11 + $0x28] sm:$0xf] }
  0x4e   : > { %5771 = vmatprep.mubr.msk.bf16.mxu1 %vm318_vm1, %v6417_v35  ;;  %v6943_v53 = vsel %vm6833_vm7, %v2954_v63, %v2955_v62  ;;  %v623_v55 = vrot.slane %v622_v37, 4  ;;  %v633_v20 = vrot.slane %v632_v38, 4  ;;  %v659_v21 = vshll.u32 %v6931_v11, 16  ;;  %v6958_v35 = vld [vmem:[%s6649_s11 + $0x1c] sm:$0xf] }
  0x4f   : > { %5914 = vmatmul.mubr.msk.bf16.vlgmr.msra.gmra.mrb[0].mxu0 %vm318_vm1, %v5340_v28  ;;  %v646_v3 = vor.u32 %v645_v49, %v642_v16  ;;  %v655_v23 = vrot.slane %v653_v19, 4  ;;  %v5328_v24 = vrot.slane %v5312_v43, 9  ;;  %v2959_v26 = vrot.slane %v6795_v34, 5  ;;  %v5314_v19 = vld [vmem:[%s6649_s11 + $0x6c] sm:$0xe] }
  0x50   : > { %5946 = vmatpush3.bf16.msra.mxu0 %v6670_v13  ;;  %5917 = vmatprep.mubr.msk.bf16.mxu0 %vm318_vm1, %v5341_v40  ;;  %v628_v29 = vsel %vm6706_vm4, %v623_v55, %v627_v5  ;;  %v638_v30 = vsel %vm6706_vm4, %v633_v20, %v637_v15  ;;  %v661_v31 = vrot.slane %v659_v21, 5  ;;  %v2962_v28 = vrot.slane %v6800_v45, 5  ;;  %v6995_v15 = vld [vmem:[%s6649_s11 + $0x2c] sm:$0x1] }
  0x51   : > { %v5079_v36 = vcombine.low %v628_v29, %v638_v30  ;;  %v647_v39 = vrot.slane %v646_v3, 4  ;;  %v656_v34 = vor.u32 %v655_v23, %v651_v18  ;;  %v5329_v44 = vrot.slane %v5313_v59, 9  ;;  %6345 = vmatprep.subr.msk.bf16.mxu0 %vm367_vm0, %v6687_v22  ;;  %v5251_v23 = vld [vmem:[%s6649_s11 + $0x74] sm:$0x1] }
  0x52   : > { %v5344_v13 = vcombine.low %v6936_v17, %v6943_v53  ;;  %v2961_v40 = vrot.slane %v2959_v26, 4  ;;  %v2966_v51 = vrot.slane %v6807_v56, 5  ;;  %v664_v52 = vshrl.u32 %v570_v10, 16 }
  0x53   : > { %v652_v45 = vsel %vm6706_vm4, %v647_v39, %v651_v18  ;;  %v657_v57 = vrot.slane %v656_v34, 4  ;;  %v667_v22 = vshll.u32 %v570_v10, 16  ;;  %v673_v12 = vshll.u32 %v6958_v35, 16 }
  0x54   : > { %v6975_v63 = vsel %vm6833_vm7, %v5328_v24, %v2959_v26  ;;  %v6979_v56 = vsel %vm6833_vm7, %v2961_v40, %v2962_v28  ;;  %v2969_v62 = vrot.slane %v6813_v2, 5  ;;  %v666_v0 = vrot.slane %v664_v52, 4 }
  0x55   : > { %5772 = vmatmul.mubr.msk.bf16.gmra.mrb[28].mxu1 %vm318_vm1, %v6418_v25  ;;  %v662_v5 = vsel %vm6706_vm4, %v657_v57, %v661_v31  ;;  %v6987_v8 = vsel %vm6833_vm7, %v5329_v44, %v2966_v51  ;;  %v2968_v9 = vrot.slane %v2966_v51, 4  ;;  %v669_v32 = vrot.slane %v667_v22, 5  ;;  %v5253_v31 = vld [vmem:[%s6649_s11 + $0x7c] sm:$0xf] }
  0x56   : > { %5777 = vmatprep.mubr.msk.bf16.mxu1 %vm318_vm1, %v5079_v36  ;;  %v5080_v7 = vcombine.low %v652_v45, %v662_v5  ;;  %v675_v37 = vrot.slane %v673_v12, 5  ;;  %v677_v38 = vshrl.u32 %v6958_v35, 16  ;;  %v683_v2 = vshll.u32 %v6970_v58, 16  ;;  %v5315_v45 = vld [vmem:[%s6649_s11 + $0x78] sm:$0xe] }
  0x57   : > { %5918 = vmatmul.mubr.msk.bf16.gmra.mrb[4].mxu0 %vm318_vm1, %v5342_v61  ;;  %v5345_v43 = vcombine.low %v6975_v63, %v6979_v56  ;;  %v670_v16 = vor.u32 %v669_v32, %v666_v0  ;;  %v688_v49 = vshrl.u32 %v573_v1, 16  ;;  %v691_v18 = vshll.u32 %v573_v1, 16  ;;  %v7026_v12 = vld [vmem:[%s6649_s11 + $0x80] sm:$0x1]  ;;  %v576_v5 = vld [vmem:[%s6649_s11 + $0x30] sm:$0xf] }
  0x58   : > { %5921 = vmatprep.mubr.msk.bf16.mxu0 %vm318_vm1, %v5343_v6  ;;  %v679_v25 = vrot.slane %v677_v38, 4  ;;  %v685_v55 = vrot.slane %v683_v2, 5  ;;  %v697_v20 = vshll.u32 %v6990_v14, 16  ;;  %v701_v33 = vshrl.u32 %v6990_v14, 16 }
  0x59   : > { %v671_v61 = vrot.slane %v670_v16, 4  ;;  %v690_v21 = vrot.slane %v688_v49, 4  ;;  %v693_v59 = vrot.slane %v691_v18, 5  ;;  %v707_v3 = vshll.u32 %v6995_v15, 16 }
  0x5a   : > { %v680_v24 = vor.u32 %v679_v25, %v675_v37  ;;  %v699_v50 = vrot.slane %v697_v20, 5  ;;  %v703_v54 = vrot.slane %v701_v33, 4  ;;  %v5330_v6 = vrot.slane %v5314_v19, 9  ;;  %v579_v19 = vld [vmem:[%s6649_s11 + $0x3c] sm:$0xf] }
  0x5b   : > { %v676_v26 = vsel %vm6706_vm4, %v671_v61, %v675_v37  ;;  %v694_v10 = vor.u32 %v693_v59, %v690_v21  ;;  %v709_v29 = vrot.slane %v707_v3, 5  ;;  %v2973_v30 = vrot.slane %v5250_v41, 5  ;;  %v7066_v41 = vld [vmem:[%s6649_s11 + $0x40] sm:$0xf] }
  0x5c   : > { %v681_v28 = vrot.slane %v680_v24, 4  ;;  %v704_v36 = vor.u32 %v703_v54, %v699_v50  ;;  %v2976_v39 = vrot.slane %v5251_v23, 5  ;;  %v2399_v34 = vshll.u32 %v5253_v31, 16  ;;  %v7069_v23 = vld [vmem:[%s6649_s11 + $0x44] sm:$0x1] }
  0x5d   : > { %5778 = vmatmul.mubr.msk.bf16.vlgmr.msra.gmra.mrb[0].mxu1 %vm318_vm1, %v5080_v7  ;;  %v2970_v44 = vsel %vm6833_vm7, %v2968_v9, %v2969_v62  ;;  %v695_v40 = vrot.slane %v694_v10, 4  ;;  %v2975_v51 = vrot.slane %v2973_v30, 4  ;;  %v2403_v52 = vshrl.u32 %v5253_v31, 16  ;;  %v7042_v9 = vld [vmem:[%s6649_s11 + $0x34] sm:$0xf] }
  0x5e   : > { %5810 = vmatpush3.bf16.msra.mxu1 %v6695_v27  ;;  %v686_v27 = vsel %vm6706_vm4, %v681_v28, %v685_v55  ;;  %v705_v57 = vrot.slane %v704_v36, 4  ;;  %v2974_v22 = vsel %vm6833_vm7, %v5330_v6, %v2973_v30  ;;  %v7028_v63 = vrot.slane %v2399_v34, 5  ;;  %v7050_v7 = vld [vmem:[%s6649_s11 + $0x38] sm:$0x1]  ;;  %v5256_v28 = vld [vmem:[%s6649_s11 + $0x88] sm:$0xf] }
  0x5f   : > { %5922 = vmatmul.mubr.msk.bf16.gmra.mrb[8].mxu0 %vm318_vm1, %v5344_v13  ;;  %v5081_v56 = vcombine.low %v676_v26, %v686_v27  ;;  %v700_v62 = vsel %vm6706_vm4, %v695_v40, %v699_v50  ;;  %v2977_v0 = vsel %vm6833_vm7, %v2975_v51, %v2976_v39  ;;  %v7038_v1 = vrot.slane %v2403_v52, 4  ;;  %v5316_v26 = vld [vmem:[%s6649_s11 + $0x84] sm:$0xe]  ;;  %v5257_v36 = vld [vmem:[%s6649_s11 + $0x8c] sm:$0x1] }
  0x60   : > { %5925 = vmatprep.mubr.msk.bf16.mxu0 %vm318_vm1, %v5345_v43  ;;  %v5346_v32 = vcombine.low %v6987_v8, %v2970_v44  ;;  %v710_v17 = vsel %vm6706_vm4, %v705_v57, %v709_v29  ;;  %v5331_v13 = vrot.slane %v5315_v45, 9  ;;  %v5347_v38 = vcombine.low %v2974_v22, %v2977_v0  ;;  %v5259_v51 = vld [vmem:[%s6649_s11 + $0x94] sm:$0xf]  ;;  %v5317_v52 = vld [vmem:[%s6649_s11 + $0x90] sm:$0xe] }
  0x61   : > { %5781 = vmatprep.mubr.msk.bf16.mxu1 %vm318_vm1, %v5081_v56  ;;  %v5082_v37 = vcombine.low %v700_v62, %v710_v17  ;;  %v2980_v2 = vrot.slane %v5253_v31, 5  ;;  %v2983_v16 = vrot.slane %v7026_v12, 5  ;;  %v712_v43 = vshrl.u32 %v576_v5, 16  ;;  %v5260_v56 = vld [vmem:[%s6649_s11 + $0x98] sm:$0x1] }
  0x62   : > { %v715_v49 = vshll.u32 %v576_v5, 16  ;;  %v721_v8 = vshll.u32 %v7042_v9, 16  ;;  %v725_v18 = vshrl.u32 %v7042_v9, 16  ;;  %v731_v33 = vshll.u32 %v7050_v7, 16  ;;  %v582_v17 = vld [vmem:[%s6649_s11 + $0x48] sm:$0xf] }
  0x63   : > { %v7062_v55 = vsel %vm6833_vm7, %v5331_v13, %v2980_v2  ;;  %v2982_v20 = vrot.slane %v2980_v2, 4  ;;  %v714_v61 = vrot.slane %v712_v43, 4  ;;  %v736_v54 = vshrl.u32 %v579_v19, 16 }
  0x64   : > { %v717_v21 = vrot.slane %v715_v49, 5  ;;  %v723_v59 = vrot.slane %v721_v8, 5  ;;  %v727_v3 = vrot.slane %v725_v18, 4  ;;  %v733_v50 = vrot.slane %v731_v33, 5 }
  0x65   : > { %5782 = vmatmul.mubr.msk.bf16.gmra.mrb[4].mxu1 %vm318_vm1, %v5082_v37  ;;  %v2984_v24 = vsel %vm6833_vm7, %v2982_v20, %v2983_v16  ;;  %v739_v6 = vshll.u32 %v579_v19, 16  ;;  %v745_v31 = vshll.u32 %v7066_v41, 16  ;;  %v738_v39 = vrot.slane %v736_v54, 4  ;;  %v7091_v16 = vld [vmem:[%s6649_s11 + $0x4c] sm:$0xf] }
  0x66   : > { %v5348_v10 = vcombine.low %v7062_v55, %v2984_v24  ;;  %v718_v29 = vor.u32 %v717_v21, %v714_v61  ;;  %v728_v30 = vor.u32 %v727_v3, %v723_v59  ;;  %v749_v44 = vshrl.u32 %v7066_v41, 16  ;;  %v7096_v19 = vld [vmem:[%s6649_s11 + $0x50] sm:$0x1]  ;;  %v585_v21 = vld [vmem:[%s6649_s11 + $0x54] sm:$0xf] }
  0x67   : > { %5926 = vmatmul.mubr.msk.bf16.gmra.mrb[12].mxu0 %vm318_vm1, %v5346_v32  ;;  %v741_v34 = vrot.slane %v739_v6, 5  ;;  %v755_v40 = vshll.u32 %v7069_v23, 16  ;;  %v747_v57 = vrot.slane %v745_v31, 5  ;;  %v5332_v22 = vrot.slane %v5316_v26, 9 }
  0x68   : > { %5929 = vmatprep.mubr.msk.bf16.mxu0 %vm318_vm1, %v5347_v38  ;;  %v719_v45 = vrot.slane %v718_v29, 4  ;;  %v729_v27 = vrot.slane %v728_v30, 4  ;;  %v751_v0 = vrot.slane %v749_v44, 4  ;;  %v2987_v32 = vrot.slane %v5256_v28, 5 }
  0x69   : > { %v742_v62 = vor.u32 %v741_v34, %v738_v39  ;;  %v757_v5 = vrot.slane %v755_v40, 5  ;;  %v2990_v2 = vrot.slane %v5257_v36, 5  ;;  %v5333_v38 = vrot.slane %v5317_v52, 9  ;;  %v7111_v39 = vld [vmem:[%s6649_s11 + $0x58] sm:$0xf] }
  0x6a   : > { %v724_v13 = vsel %vm6706_vm4, %v719_v45, %v723_v59  ;;  %v734_v37 = vsel %vm6706_vm4, %v729_v27, %v733_v50  ;;  %v752_v8 = vor.u32 %v751_v0, %v747_v57  ;;  %v2988_v18 = vsel %vm6833_vm7, %v5332_v22, %v2987_v32  ;;  %v5262_v52 = vld [vmem:[%s6649_s11 + $0xa0] sm:$0xf] }
  0x6b   : > { %v5083_v43 = vcombine.low %v724_v13, %v734_v37  ;;  %v743_v49 = vrot.slane %v742_v62, 4  ;;  %v2989_v55 = vrot.slane %v2987_v32, 4  ;;  %v2994_v20 = vrot.slane %v5259_v51, 5  ;;  %v5318_v62 = vld [vmem:[%s6649_s11 + $0x9c] sm:$0xe] }
  0x6c   : > { %v2997_v33 = vrot.slane %v5260_v56, 5  ;;  %v760_v61 = vshrl.u32 %v582_v17, 16  ;;  %v753_v3 = vrot.slane %v752_v8, 4  ;;  %v763_v24 = vshll.u32 %v582_v17, 16  ;;  %v5263_v56 = vld [vmem:[%s6649_s11 + $0xa4] sm:$0x1] }
  0x6d   : > { %5785 = vmatprep.mubr.msk.bf16.mxu1 %vm318_vm1, %v5083_v43  ;;  %v748_v59 = vsel %vm6706_vm4, %v743_v49, %v747_v57  ;;  %v769_v50 = vshll.u32 %v7091_v16, 16  ;;  %v2991_v54 = vsel %vm6833_vm7, %v2989_v55, %v2990_v2  ;;  %v2995_v6 = vsel %vm6833_vm7, %v5333_v38, %v2994_v20  ;;  %v5265_v13 = vld [vmem:[%s6649_s11 + $0xac] sm:$0xf]  ;;  %v5319_v37 = vld [vmem:[%s6649_s11 + $0xa8] sm:$0xe] }
  0x6e   : > { %v2996_v26 = vrot.slane %v2994_v20, 4  ;;  %v762_v29 = vrot.slane %v760_v61, 4  ;;  %v758_v30 = vsel %vm6706_vm4, %v753_v3, %v757_v5  ;;  %v5349_v31 = vcombine.low %v2988_v18, %v2991_v54  ;;  %v5266_v8 = vld [vmem:[%s6649_s11 + $0xb0] sm:$0x1]  ;;  %v588_v18 = vld [vmem:[%s6649_s11 + $0x60] sm:$0xf] }
  0x6f   : > { %5930 = vmatmul.mubr.msk.bf16.gmra.mrb[16].mxu0 %vm318_vm1, %v5348_v10  ;;  %v765_v28 = vrot.slane %v763_v24, 5  ;;  %v771_v36 = vrot.slane %v769_v50, 5  ;;  %v5084_v34 = vcombine.low %v748_v59, %v758_v30  ;;  %v773_v40 = vshrl.u32 %v7091_v16, 16  ;;  %v7118_v10 = vld [vmem:[%s6649_s11 + $0x5c] sm:$0x1] }
  0x70   : > { %v2998_v44 = vsel %vm6833_vm7, %v2996_v26, %v2997_v33  ;;  %v779_v51 = vshll.u32 %v7096_v19, 16  ;;  %5933 = vmatprep.mubr.msk.bf16.mxu0 %vm318_vm1, %v5349_v31  ;;  %v784_v57 = vshrl.u32 %v585_v21, 16  ;;  %v787_v22 = vshll.u32 %v585_v21, 16 }
  0x71   : > { %v5350_v45 = vcombine.low %v2995_v6, %v2998_v44  ;;  %v766_v27 = vor.u32 %v765_v28, %v762_v29  ;;  %5786 = vmatmul.mubr.msk.bf16.gmra.mrb[8].mxu1 %vm318_vm1, %v5084_v34  ;;  %v775_v0 = vrot.slane %v773_v40, 4  ;;  %v793_v32 = vshll.u32 %v7111_v39, 16  ;;  %v7140_v40 = vld [vmem:[%s6649_s11 + $0x64] sm:$0xf] }
  0x72   : > { %v781_v5 = vrot.slane %v779_v51, 5  ;;  %v797_v17 = vshrl.u32 %v7111_v39, 16  ;;  %v786_v38 = vrot.slane %v784_v57, 4  ;;  %v789_v43 = vrot.slane %v787_v22, 5  ;;  %v7149_v22 = vld [vmem:[%s6649_s11 + $0x68] sm:$0x1] }
  0x73   : > { %v767_v2 = vrot.slane %v766_v27, 4  ;;  %v803_v49 = vshll.u32 %v7118_v10, 16  ;;  %v776_v55 = vor.u32 %v775_v0, %v771_v36  ;;  %v795_v20 = vrot.slane %v793_v32, 5 }
  0x74   : > { %v799_v33 = vrot.slane %v797_v17, 4  ;;  %v5334_v61 = vrot.slane %v5318_v62, 9  ;;  %v790_v59 = vor.u32 %v789_v43, %v786_v38  ;;  %v3001_v24 = vrot.slane %v5262_v52, 5  ;;  %v7153_v62 = vld [vmem:[%s6649_s11 + $0x70] sm:$0xf] }
  0x75   : > { %v772_v21 = vsel %vm6706_vm4, %v767_v2, %v771_v36  ;;  %v805_v3 = vrot.slane %v803_v49, 5  ;;  %v777_v50 = vrot.slane %v776_v55, 4  ;;  %v3004_v6 = vrot.slane %v5263_v56, 5  ;;  %v591_v56 = vld [vmem:[%s6649_s11 + $0x6c] sm:$0xf] }
  0x76   : > { %v800_v54 = vor.u32 %v799_v33, %v795_v20  ;;  %v5335_v26 = vrot.slane %v5319_v37, 9  ;;  %v791_v29 = vrot.slane %v790_v59, 4  ;;  %v3002_v30 = vsel %vm6833_vm7, %v5334_v61, %v3001_v24  ;;  %v5268_v49 = vld [vmem:[%s6649_s11 + $0xb8] sm:$0xf] }
  0x77   : > { %5934 = vmatmul.mubr.msk.bf16.gmra.mrb[20].mxu0 %vm318_vm1, %v5350_v45  ;;  %v3003_v31 = vrot.slane %v3001_v24, 4  ;;  %v3008_v28 = vrot.slane %v5265_v13, 5  ;;  %v782_v36 = vsel %vm6706_vm4, %v777_v50, %v781_v5  ;;  %v3011_v44 = vrot.slane %v5266_v8, 5  ;;  %v7158_v13 = vld [vmem:[%s6649_s11 + $0x74] sm:$0x1] }
  0x78   : > { %v801_v34 = vrot.slane %v800_v54, 4  ;;  %v808_v51 = vshrl.u32 %v588_v18, 16  ;;  %v5085_v52 = vcombine.low %v772_v21, %v782_v36  ;;  %v796_v45 = vsel %vm6706_vm4, %v791_v29, %v795_v20  ;;  %v5320_v24 = vld [vmem:[%s6649_s11 + $0xb4] sm:$0xe]  ;;  %v5321_v29 = vld [vmem:[%s6649_s11 + $0xc0] sm:$0xe] }
  0x79   : > { %v3005_v27 = vsel %vm6833_vm7, %v3003_v31, %v3004_v6  ;;  %v3009_v57 = vsel %vm6833_vm7, %v5335_v26, %v3008_v28  ;;  %v3010_v32 = vrot.slane %v3008_v28, 4  ;;  %v811_v2 = vshll.u32 %v588_v18, 16 }
  0x7a   : > { %v806_v0 = vsel %vm6706_vm4, %v801_v34, %v805_v3  ;;  %v5351_v5 = vcombine.low %v3002_v30, %v3005_v27  ;;  %v810_v17 = vrot.slane %v808_v51, 4  ;;  %5789 = vmatprep.mubr.msk.bf16.mxu1 %vm318_vm1, %v5085_v52  ;;  %v817_v38 = vshll.u32 %v7140_v40, 16  ;;  %v5269_v3 = vld [vmem:[%s6649_s11 + $0xbc] sm:$0x1]  ;;  %v5271_v34 = vld [vmem:[%s6649_s11 + $0xc4] sm:$0xf] }
  0x7b   : > { %v5086_v37 = vcombine.low %v796_v45, %v806_v0  ;;  %v821_v43 = vshrl.u32 %v7140_v40, 16  ;;  %v3012_v8 = vsel %vm6833_vm7, %v3010_v32, %v3011_v44  ;;  %v827_v55 = vshll.u32 %v7149_v22, 16  ;;  %v5272_v27 = vld [vmem:[%s6649_s11 + $0xc8] sm:$0x1] }
  0x7c   : > { %5937 = vmatprep.mubr.msk.bf16.mxu0 %vm318_vm1, %v5351_v5  ;;  %v832_v20 = vshrl.u32 %v591_v56, 16  ;;  %v835_v33 = vshll.u32 %v591_v56, 16  ;;  %v5352_v61 = vcombine.low %v3009_v57, %v3012_v8  ;;  %v813_v18 = vrot.slane %v811_v2, 5  ;;  %v594_v57 = vld [vmem:[%s6649_s11 + $0x78] sm:$0xf] }
  0x7d   : > { %5790 = vmatmul.mubr.msk.bf16.gmra.mrb[12].mxu1 %vm318_vm1, %v5086_v37  ;;  %v819_v21 = vrot.slane %v817_v38, 5  ;;  %v823_v59 = vrot.slane %v821_v43, 4  ;;  %v829_v50 = vrot.slane %v827_v55, 5  ;;  %v841_v26 = vshll.u32 %v7153_v62, 16  ;;  %v7184_v43 = vld [vmem:[%s8293_s1 + $0x6] sm:$0x3] }
  0x7e   : > { %v834_v54 = vrot.slane %v832_v20, 4  ;;  %v837_v6 = vrot.slane %v835_v33, 5  ;;  %v814_v30 = vor.u32 %v813_v18, %v810_v17  ;;  %v845_v28 = vshrl.u32 %v7153_v62, 16  ;;  %v7191_v33 = vld [vmem:[%s6649_s11 + $0x7c] sm:$0xf]  ;;  %6340 = vmatprep.subr.msk.bf16.mxu1 %vm367_vm0, %v7184_v43 }
  0x7f   : > { %5938 = vmatmul.mubr.msk.bf16.gmra.mrb[24].mxu0 %vm318_vm1, %v5352_v61  ;;  %v824_v31 = vor.u32 %v823_v59, %v819_v21  ;;  %v851_v36 = vshll.u32 %v7158_v13, 16  ;;  %v843_v51 = vrot.slane %v841_v26, 5  ;;  %v5336_v52 = vrot.slane %v5320_v24, 9  ;;  %v7194_v61 = vld [vmem:[%s6649_s11 + $0x80] sm:$0x1] }
  0x80   : > { %v838_v44 = vor.u32 %v837_v6, %v834_v54  ;;  %v3015_v45 = vrot.slane %v5268_v49, 5  ;;  %v815_v56 = vrot.slane %v814_v30, 4  ;;  %v847_v5 = vrot.slane %v845_v28, 4  ;;  %v597_v24 = vld [vmem:[%s6649_s11 + $0x84] sm:$0xf] }
  0x81   : > { %v825_v0 = vrot.slane %v824_v31, 4  ;;  %v853_v32 = vrot.slane %v851_v36, 5  ;;  %v3018_v38 = vrot.slane %v5269_v3, 5  ;;  %v5337_v20 = vrot.slane %v5321_v29, 9  ;;  %v7204_v29 = vld [vmem:[%s6649_s11 + $0x88] sm:$0xf] }
  0x82   : > { %v839_v37 = vrot.slane %v838_v44, 4  ;;  %v3016_v17 = vsel %vm6833_vm7, %v5336_v52, %v3015_v45  ;;  %v3017_v2 = vrot.slane %v3015_v45, 4  ;;  %v820_v49 = vsel %vm6706_vm4, %v815_v56, %v819_v21  ;;  %v7216_v45 = vld [vmem:[%s6649_s11 + $0x8c] sm:$0x1] }
  0x83   : > { %v830_v8 = vsel %vm6706_vm4, %v825_v0, %v829_v50  ;;  %v848_v55 = vor.u32 %v847_v5, %v843_v51  ;;  %v3022_v3 = vrot.slane %v5271_v34, 5  ;;  %v3025_v6 = vrot.slane %v5272_v27, 5  ;;  %v6419_v27 = vld [vmem:[%s6649_s11 + $0x18] sm:$0xff]  }
  0x84   : > { %v5087_v18 = vcombine.low %v820_v49, %v830_v8  ;;  %v844_v59 = vsel %vm6706_vm4, %v839_v37, %v843_v51  ;;  %v3019_v21 = vsel %vm6833_vm7, %v3017_v2, %v3018_v38  ;;  %v856_v26 = vshrl.u32 %v594_v57, 16  ;;  %v600_v37 = vld [vmem:[%s6649_s11 + $0x90] sm:$0xf]  ;;  %v7223_v49 = vld [vmem:[%s6649_s11 + $0x94] sm:$0xf] }
  0x85   : > { %v849_v50 = vrot.slane %v848_v55, 4  ;;  %v5353_v54 = vcombine.low %v3016_v17, %v3019_v21  ;;  %v3023_v30 = vsel %vm6833_vm7, %v5337_v20, %v3022_v3  ;;  %v3024_v31 = vrot.slane %v3022_v3, 4 }
  0x86   : > { %5793 = vmatprep.mubr.msk.bf16.mxu1 %vm318_vm1, %v5087_v18  ;;  %v859_v28 = vshll.u32 %v594_v57, 16  ;;  %v865_v36 = vshll.u32 %v7191_v33, 16  ;;  %v858_v44 = vrot.slane %v856_v26, 4  ;;  %v869_v51 = vshrl.u32 %v7191_v33, 16 }
  0x87   : > { %v854_v34 = vsel %vm6706_vm4, %v849_v50, %v853_v32  ;;  %5941 = vmatprep.mubr.msk.bf16.mxu0 %vm318_vm1, %v5353_v54  ;;  %v875_v52 = vshll.u32 %v7194_v61, 16  ;;  %v3026_v57 = vsel %vm6833_vm7, %v3024_v31, %v3025_v6  ;;  %v880_v38 = vshrl.u32 %v597_v24, 16 }
  0x88   : > { %v5088_v56 = vcombine.low %v844_v59, %v854_v34  ;;  %v861_v0 = vrot.slane %v859_v28, 5  ;;  %v867_v5 = vrot.slane %v865_v36, 5  ;;  %v5354_v32 = vcombine.low %v3023_v30, %v3026_v57  ;;  %v7229_v59 = vld [vmem:[%s6649_s11 + $0x98] sm:$0x1] }
  0x89   : > { %v871_v17 = vrot.slane %v869_v51, 4  ;;  %v877_v2 = vrot.slane %v875_v52, 5  ;;  %v883_v55 = vshll.u32 %v597_v24, 16  ;;  %v889_v20 = vshll.u32 %v7204_v29, 16  ;;  %v603_v24 = vld [vmem:[%s6649_s11 + $0x9c] sm:$0xf] }
  0x8a   : > { %5794 = vmatmul.mubr.msk.bf16.gmra.mrb[16].mxu1 %vm318_vm1, %v5088_v56  ;;  %v862_v8 = vor.u32 %v861_v0, %v858_v44  ;;  %v893_v18 = vshrl.u32 %v7204_v29, 16  ;;  %5942 = vmatmul.mubr.msk.bf16.gmra.mrb[28].mxu0 %vm318_vm1, %v5354_v32  ;;  %v882_v3 = vrot.slane %v880_v38, 4  ;;  %v899_v50 = vshll.u32 %v7216_v45, 16  ;;  %v7236_v51 = vld [vmem:[%s6649_s11 + $0xa0] sm:$0xf]  ;;  %v6420_v32 = vld [vmem:[%s6649_s11 + $0x24] sm:$0xff]  }
  0x8b   : > { %v872_v21 = vor.u32 %v871_v17, %v867_v5  ;;  %v904_v54 = vshrl.u32 %v600_v37, 16  ;;  %v885_v26 = vrot.slane %v883_v55, 5  ;;  %v891_v30 = vrot.slane %v889_v20, 5  ;;  %5947 = vmatprep.mubr.msk.bf16.mxu0 %vm318_vm1, %v6419_v27 }
  0x8c   : > { %v863_v6 = vrot.slane %v862_v8, 4  ;;  %v895_v31 = vrot.slane %v893_v18, 4  ;;  %v901_v36 = vrot.slane %v899_v50, 5  ;;  %v907_v44 = vshll.u32 %v600_v37, 16  ;;  %v7247_v8 = vld [vmem:[%s6649_s11 + $0xa4] sm:$0x1] }
  0x8d   : > { %v873_v28 = vrot.slane %v872_v21, 4  ;;  %v906_v34 = vrot.slane %v904_v54, 4  ;;  %v886_v56 = vor.u32 %v885_v26, %v882_v3  ;;  %v913_v0 = vshll.u32 %v7223_v49, 16  ;;  %v6421_v21 = vld [vmem:[%s6649_s11 + $0x30] sm:$0xff]   ;;  %v606_v26 = vld [vmem:[%s6649_s11 + $0xa8] sm:$0xf] }
  0x8e   : > { %v868_v52 = vsel %vm6706_vm4, %v863_v6, %v867_v5  ;;  %v896_v57 = vor.u32 %v895_v31, %v891_v30  ;;  %v909_v17 = vrot.slane %v907_v44, 5  ;;  %v917_v38 = vshrl.u32 %v7223_v49, 16 }
  0x8f   : > { %v878_v27 = vsel %vm6706_vm4, %v873_v28, %v877_v2  ;;  %v923_v37 = vshll.u32 %v7229_v59, 16  ;;  %v887_v20 = vrot.slane %v886_v56, 4  ;;  %v915_v18 = vrot.slane %v913_v0, 5 }
  0x90   : > { %v5089_v55 = vcombine.low %v868_v52, %v878_v27  ;;  %v897_v5 = vrot.slane %v896_v57, 4  ;;  %v910_v3 = vor.u32 %v909_v17, %v906_v34  ;;  %v919_v50 = vrot.slane %v917_v38, 4  ;;  %v7258_v52 = vld [vmem:[%s6649_s11 + $0xac] sm:$0xf]  ;;  %v7269_v38 = vld [vmem:[%s6649_s11 + $0xb0] sm:$0x1] }
  0x91   : > { %v925_v54 = vrot.slane %v923_v37, 5  ;;  %v928_v6 = vshrl.u32 %v603_v24, 16  ;;  %v892_v2 = vsel %vm6706_vm4, %v887_v20, %v891_v30  ;;  %v931_v28 = vshll.u32 %v603_v24, 16 }
  0x92   : > { %5797 = vmatprep.mubr.msk.bf16.mxu1 %vm318_vm1, %v5089_v55  ;;  %v902_v31 = vsel %vm6706_vm4, %v897_v5, %v901_v36  ;;  %v937_v44 = vshll.u32 %v7236_v51, 16  ;;  %5948 = vmatmul.mubr.msk.bf16.vlgmr.msra.gmra.mrb[0].mxu0 %vm318_vm1, %v6420_v32  ;;  %v911_v34 = vrot.slane %v910_v3, 4  ;;  %v920_v57 = vor.u32 %v919_v50, %v915_v18  ;;  %v609_v50 = vld [vmem:[%s6649_s11 + $0xb4] sm:$0xf] }
  0x93   : > { %v5090_v56 = vcombine.low %v892_v2, %v902_v31  ;;  %v930_v0 = vrot.slane %v928_v6, 4  ;;  %5980 = vmatpush3.bf16.msra.mxu0 %v6713_v46  ;;  %v933_v27 = vrot.slane %v931_v28, 5  ;;  %v941_v36 = vshrl.u32 %v7236_v51, 16  ;;  %5951 = vmatprep.mubr.msk.bf16.mxu0 %vm318_vm1, %v6421_v21  ;;  %v6422_v6 = vld [vmem:[%s6649_s11 + $0x3c] sm:$0xff]   ;;  %v7278_v28 = vld [vmem:[%s6649_s11 + $0xb8] sm:$0xf] }
  0x94   : > { %v939_v30 = vrot.slane %v937_v44, 5  ;;  %v947_v24 = vshll.u32 %v7247_v8, 16  ;;  %v916_v32 = vsel %vm6706_vm4, %v911_v34, %v915_v18  ;;  %v921_v17 = vrot.slane %v920_v57, 4  ;;  %v6423_v57 = vld [vmem:[%s6649_s11 + $0x48] sm:$0xff]  }
  0x95   : > { %5798 = vmatmul.mubr.msk.bf16.gmra.mrb[20].mxu1 %vm318_vm1, %v5090_v56  ;;  %v952_v46 = vshrl.u32 %v606_v26, 16  ;;  %v955_v37 = vshll.u32 %v606_v26, 16  ;;  %v934_v55 = vor.u32 %v933_v27, %v930_v0  ;;  %v943_v20 = vrot.slane %v941_v36, 4 }
  0x96   : > { %v949_v5 = vrot.slane %v947_v24, 5  ;;  %v961_v3 = vshll.u32 %v7258_v52, 16  ;;  %v926_v21 = vsel %vm6706_vm4, %v921_v17, %v925_v54  ;;  %v965_v18 = vshrl.u32 %v7258_v52, 16  ;;  %v7285_v54 = vld [vmem:[%s8293_s1 + $0x10] sm:$0x3] }
  0x97   : > { %v954_v2 = vrot.slane %v952_v46, 4  ;;  %v957_v31 = vrot.slane %v955_v37, 5  ;;  %v5091_v44 = vcombine.low %v916_v32, %v926_v21  ;;  %v935_v26 = vrot.slane %v934_v55, 4  ;;  %v7291_v46 = vld [vmem:[%s6649_s11 + $0xbc] sm:$0x1]  ;;  %6346 = vmatprep.subr.msk.bf16.mxu0 %vm367_vm0, %v7285_v54 }
  0x98   : > { %v944_v56 = vor.u32 %v943_v20, %v939_v30  ;;  %v963_v34 = vrot.slane %v961_v3, 5  ;;  %v967_v27 = vrot.slane %v965_v18, 4  ;;  %v971_v36 = vshll.u32 %v7269_v38, 16 }
  0x99   : > { %v958_v0 = vor.u32 %v957_v31, %v954_v2  ;;  %v976_v24 = vshrl.u32 %v609_v50, 16  ;;  %5801 = vmatprep.mubr.msk.bf16.mxu1 %vm318_vm1, %v5091_v44  ;;  %v940_v32 = vsel %vm6706_vm4, %v935_v26, %v939_v30  ;;  %v979_v37 = vshll.u32 %v609_v50, 16  ;;  %v1293_v31 = vld [vmem:[%s6649_s11] sm:$0xe]  ;;  %v1294_v26 = vld [vmem:[%s6649_s11 + $0xc] sm:$0xe] }
  0x9a   : > { %v945_v17 = vrot.slane %v944_v56, 4  ;;  %v985_v55 = vshll.u32 %v7278_v28, 16  ;;  %5952 = vmatmul.mubr.msk.bf16.gmra.mrb[4].mxu0 %vm318_vm1, %v6422_v6  ;;  %v968_v3 = vor.u32 %v967_v27, %v963_v34  ;;  %v973_v21 = vrot.slane %v971_v36, 5 }
  0x9b   : > { %v959_v20 = vrot.slane %v958_v0, 4  ;;  %v978_v2 = vrot.slane %v976_v24, 4  ;;  %v981_v18 = vrot.slane %v979_v37, 5  ;;  %v989_v50 = vshrl.u32 %v7278_v28, 16  ;;  %5955 = vmatprep.mubr.msk.bf16.mxu0 %vm318_vm1, %v6423_v57  ;;  %v1295_v37 = vld [vmem:[%s6649_s11 + $0x18] sm:$0xe] }
  0x9c   : > { %v950_v30 = vsel %vm6706_vm4, %v945_v17, %v949_v5  ;;  %v987_v44 = vrot.slane %v985_v55, 5  ;;  %v969_v0 = vrot.slane %v968_v3, 4  ;;  %v995_v27 = vshll.u32 %v7291_v46, 16  ;;  %v6451_v5 = vld [vmem:[%s6649_s11 + $0x4] sm:$0xf] }
  0x9d   : > { %v5092_v56 = vcombine.low %v940_v32, %v950_v30  ;;  %v964_v6 = vsel %vm6706_vm4, %v959_v20, %v963_v34  ;;  %v982_v36 = vor.u32 %v981_v18, %v978_v2  ;;  %v991_v24 = vrot.slane %v989_v50, 4  ;;  %v6424_v32 = vld [vmem:[%s6649_s11 + $0x54] sm:$0xff]   ;;  %v6425_v18 = vld [vmem:[%s6649_s11 + $0x60] sm:$0xff]  }
  0x9e   : > { %v5111_v25 = vrot.slane %v1293_v31, 9  ;;  %v1362_v17 = vrot.slane %v6451_v5, 5  ;;  %v974_v57 = vsel %vm6706_vm4, %v969_v0, %v973_v21  ;;  %v997_v55 = vrot.slane %v995_v27, 5 }
  0x9f   : > { %5802 = vmatmul.mubr.msk.bf16.gmra.mrb[24].mxu1 %vm318_vm1, %v5092_v56  ;;  %v1365_v30 = vrot.slane %v6911_v48, 5  ;;  %v5112_v34 = vrot.slane %v1294_v26, 9  ;;  %v5093_v20 = vcombine.low %v964_v6, %v974_v57  ;;  %v983_v3 = vrot.slane %v982_v36, 4 }
  0xa0   : > { %v992_v2 = vor.u32 %v991_v24, %v987_v44  ;;  %v1363_v31 = vsel %vm6833_vm7, %v5111_v25, %v1362_v17  ;;  %v1364_v50 = vrot.slane %v1362_v17, 4  ;;  %v1369_v56 = vrot.slane %v6920_v60, 5  ;;  %v1296_v25 = vld [vmem:[%s6649_s11 + $0x24] sm:$0xe] }
  0xa1   : > { %v1372_v5 = vrot.slane %v6931_v11, 5  ;;  %v5113_v21 = vrot.slane %v1295_v37, 9  ;;  %5805 = vmatprep.mubr.msk.bf16.mxu1 %vm318_vm1, %v5093_v20  ;;  %v988_v48 = vsel %vm6706_vm4, %v983_v3, %v987_v44  ;;  %v1376_v6 = vrot.slane %v6958_v35, 5  ;;  %v1297_v35 = vld [vmem:[%s6649_s11 + $0x30] sm:$0xe] }
  0xa2   : > { %v993_v26 = vrot.slane %v992_v2, 4  ;;  %v1379_v0 = vrot.slane %v6970_v58, 5  ;;  %5956 = vmatmul.mubr.msk.bf16.gmra.mrb[8].mxu0 %vm318_vm1, %v6424_v32  ;;  %v1366_v60 = vsel %vm6833_vm7, %v1364_v50, %v1365_v30  ;;  %v7329_v11 = vsel %vm6833_vm7, %v5112_v34, %v1369_v56  ;;  %v1298_v34 = vld [vmem:[%s6649_s11 + $0x3c] sm:$0xe]  ;;  %v1300_v50 = vld [vmem:[%s6649_s11 + $0x54] sm:$0xe] }
  0xa3   : > { %v1371_v27 = vrot.slane %v1369_v56, 4  ;;  %v7333_v44 = vsel %vm367_vm0, %v7184_v43, 0  ;;  %v5128_v36 = vcombine.low %v1363_v31, %v1366_v60  ;;  %5959 = vmatprep.mubr.msk.bf16.mxu0 %vm318_vm1, %v6425_v18  ;;  %v1377_v24 = vsel %vm6833_vm7, %v5113_v21, %v1376_v6  ;;  %v6426_v43 = vld [vmem:[%s6649_s11 + $0x6c] sm:$0xff]   ;;  %v6427_v2 = vld [vmem:[%s6649_s11 + $0x78] sm:$0xff]   ;;  %v1299_v18 = vld [vmem:[%s6649_s11 + $0x48] sm:$0xe] }
  0xa4   : > { %v998_v58 = vsel %vm6706_vm4, %v993_v26, %v997_v55  ;;  %v1378_v17 = vrot.slane %v1376_v6, 4  ;;  %v5114_v32 = vrot.slane %v1296_v25, 9  ;;  %v1383_v30 = vrot.slane %v6990_v14, 5 }
  0xa5   : > { %v5094_v37 = vcombine.low %v988_v48, %v998_v58  ;;  %v1373_v57 = vsel %vm6833_vm7, %v1371_v27, %v1372_v5  ;;  %v1386_v3 = vrot.slane %v6995_v15, 5  ;;  %v5115_v31 = vrot.slane %v1297_v35, 9 }
  0xa6   : > { %v5129_v55 = vcombine.low %v7329_v11, %v1373_v57  ;;  %v1380_v20 = vsel %vm6833_vm7, %v1378_v17, %v1379_v0  ;;  %v7356_v5 = vsel %vm6833_vm7, %v5114_v32, %v1383_v30  ;;  %v1385_v14 = vrot.slane %v1383_v30, 4 }
  0xa7   : > { %5806 = vmatmul.mubr.msk.bf16.gmra.mrb[28].mxu1 %vm318_vm1, %v5094_v37  ;;  %v5130_v56 = vcombine.low %v1377_v24, %v1380_v20  ;;  %v1390_v21 = vrot.slane %v7042_v9, 5  ;;  %v1393_v48 = vrot.slane %v7050_v7, 5  ;;  %v5116_v26 = vrot.slane %v1298_v34, 9  ;;  %v1301_v24 = vld [vmem:[%s6649_s11 + $0x60] sm:$0xe]  ;;  %v6428_v20 = vld [vmem:[%s6649_s11 + $0x84] sm:$0xff]  }
  0xa8   : > { %5811 = vmatprep.mubr.msk.bf16.mxu1 %vm318_vm1, %v5128_v36  ;;  %v1397_v15 = vrot.slane %v7066_v41, 5  ;;  %v1400_v6 = vrot.slane %v7069_v23, 5  ;;  %v7365_v0 = vsel %vm6833_vm7, %v1385_v14, %v1386_v3  ;;  %v5117_v9 = vrot.slane %v1299_v18, 9 }
  0xa9   : > { %v7369_v25 = vsel %vm6833_vm7, %v5115_v31, %v1390_v21  ;;  %v1392_v60 = vrot.slane %v1390_v21, 4  ;;  %v5131_v7 = vcombine.low %v7356_v5, %v7365_v0  ;;  %v1404_v11 = vrot.slane %v7091_v16, 5 }
  0xaa   : > { %v7375_v41 = vsel %vm6833_vm7, %v5116_v26, %v1397_v15  ;;  %v1399_v23 = vrot.slane %v1397_v15, 4  ;;  %5960 = vmatmul.mubr.msk.bf16.gmra.mrb[12].mxu0 %vm318_vm1, %v6426_v43  ;;  %v1407_v35 = vrot.slane %v7096_v19, 5  ;;  %v5118_v58 = vrot.slane %v1300_v50, 9  ;;  %v1302_v43 = vld [vmem:[%s6649_s11 + $0x6c] sm:$0xe] }
  0xab   : > { %v7381_v27 = vsel %vm6833_vm7, %v1392_v60, %v1393_v48  ;;  %v1411_v36 = vrot.slane %v7111_v39, 5  ;;  %5963 = vmatprep.mubr.msk.bf16.mxu0 %vm318_vm1, %v6427_v2  ;;  %v7395_v37 = vsel %vm6833_vm7, %v5117_v9, %v1404_v11  ;;  %v1406_v57 = vrot.slane %v1404_v11, 4  ;;  %v1303_v19 = vld [vmem:[%s6649_s11 + $0x78] sm:$0xe]  ;;  %v1304_v48 = vld [vmem:[%s6649_s11 + $0x84] sm:$0xe] }
  0xac   : > { %v5132_v17 = vcombine.low %v7369_v25, %v7381_v27  ;;  %v7391_v16 = vsel %vm6833_vm7, %v1399_v23, %v1400_v6  ;;  %v1414_v34 = vrot.slane %v7118_v10, 5  ;;  %v5119_v2 = vrot.slane %v1301_v24, 9  ;;  %v5436_v6 = vld [vmem:[%s6649_s11 + $0x18] sm:$0xf]  ;;  %v7439_v9 = vld [vmem:[%s6649_s11 + $0x1c] sm:$0xf] }
  0xad   : > { %v5133_v39 = vcombine.low %v7375_v41, %v7391_v16  ;;  %v7403_v32 = vsel %vm6833_vm7, %v5118_v58, %v1411_v36  ;;  %v1413_v30 = vrot.slane %v1411_v36, 4  ;;  %v7409_v3 = vsel %vm6833_vm7, %v1406_v57, %v1407_v35  ;;  %v6452_v23 = vld [vmem:[%s8293_s1 + $0x8] sm:$0x3]  ;;  %v7452_v36 = vld [vmem:[%s6649_s11 + $0x20] sm:$0x1] }
  0xae   : > { %v1418_v31 = vrot.slane %v7140_v40, 5  ;;  %v1421_v18 = vrot.slane %v7149_v22, 5  ;;  %v5134_v50 = vcombine.low %v7395_v37, %v7409_v3  ;;  %v5120_v10 = vrot.slane %v1302_v43, 9  ;;  %v6429_v40 = vld [vmem:[%s6649_s11 + $0x90] sm:$0xff]   ;;  %v5439_v43 = vld [vmem:[%s6649_s11 + $0x24] sm:$0xf] }
  0xaf   : > { %5812 = vmatmul.mubr.msk.bf16.vlgmr.msra.gmra.mrb[0].mxu1 %vm318_vm1, %v5129_v55  ;;  %v7418_v14 = vsel %vm6833_vm7, %v1413_v30, %v1414_v34  ;;  %v1425_v21 = vrot.slane %v7153_v62, 5  ;;  %v1428_v15 = vrot.slane %v7158_v13, 5  ;;  %v1432_v60 = vrot.slane %v7191_v33, 5 }
  0xb0   : > { %5815 = vmatprep.mubr.msk.bf16.mxu1 %vm318_vm1, %v5130_v56  ;;  %5844 = vmatpush3.bf16.msra.mxu1 %v7333_v44  ;;  %v5135_v22 = vcombine.low %v7403_v32, %v7418_v14  ;;  %v7429_v55 = vsel %vm6833_vm7, %v5119_v2, %v1418_v31  ;;  %v1420_v26 = vrot.slane %v1418_v31, 4  ;;  %v5121_v44 = vrot.slane %v1303_v19, 9 }
  0xb1   : > { %v7435_v62 = vsel %vm6833_vm7, %v5120_v10, %v1425_v21  ;;  %v1427_v56 = vrot.slane %v1425_v21, 4  ;;  %6342 = vmatprep.subr.msk.bf16.mxu1 %vm367_vm0, %v6452_v23  ;;  %v1435_v11 = vrot.slane %v7194_v61, 5  ;;  %v5122_v35 = vrot.slane %v1304_v48, 9  ;;  %v6431_v23 = vld [vmem:[%s6649_s11 + $0xa8] sm:$0xff]  }
  0xb2   : > { %v7447_v13 = vsel %vm6833_vm7, %v1420_v26, %v1421_v18  ;;  %v1439_v58 = vrot.slane %v7204_v29, 5  ;;  %5964 = vmatmul.mubr.msk.bf16.gmra.mrb[16].mxu0 %vm318_vm1, %v6428_v20  ;;  %v7463_v57 = vsel %vm6833_vm7, %v5121_v44, %v1432_v60  ;;  %v1434_v61 = vrot.slane %v1432_v60, 4  ;;  %v7491_v26 = vld [vmem:[%s6649_s11 + $0x2c] sm:$0x1] }
  0xb3   : > { %v5136_v33 = vcombine.low %v7429_v55, %v7447_v13  ;;  %v7459_v24 = vsel %vm6833_vm7, %v1427_v56, %v1428_v15  ;;  %5967 = vmatprep.mubr.msk.bf16.mxu0 %vm318_vm1, %v6429_v40  ;;  %v1442_v34 = vrot.slane %v7216_v45, 5  ;;  %v3729_v2 = vshrl.u32 %v5436_v6, 16  ;;  %v7488_v40 = vld [vmem:[%s6649_s11 + $0x28] sm:$0xf]  ;;  %v6430_v15 = vld [vmem:[%s6649_s11 + $0x9c] sm:$0xff]  }
  0xb4   : > { %v5137_v29 = vcombine.low %v7435_v62, %v7459_v24  ;;  %v7471_v19 = vsel %vm6833_vm7, %v5122_v35, %v1439_v58  ;;  %v1441_v30 = vrot.slane %v1439_v58, 4  ;;  %v7476_v20 = vsel %vm6833_vm7, %v1434_v61, %v1435_v11  ;;  %v7608_v55 = vld [vmem:[%s6649_s11 + $0x50] sm:$0x1] }
  0xb5   : > { %v3732_v31 = vshll.u32 %v5436_v6, 16  ;;  %v3738_v18 = vshll.u32 %v7439_v9, 16  ;;  %v5138_v10 = vcombine.low %v7463_v57, %v7476_v20  ;;  %v3742_v48 = vshrl.u32 %v7439_v9, 16 }
  0xb6   : > { %v7483_v21 = vsel %vm6833_vm7, %v1441_v30, %v1442_v34  ;;  %v3748_v45 = vshll.u32 %v7452_v36, 16  ;;  %v3731_v56 = vrot.slane %v3729_v2, 4  ;;  %v3753_v5 = vshrl.u32 %v5439_v43, 16  ;;  %v1305_v34 = vld [vmem:[%s6649_s11 + $0x90] sm:$0xe] }
  0xb7   : > { %5816 = vmatmul.mubr.msk.bf16.gmra.mrb[4].mxu1 %vm318_vm1, %v5131_v7  ;;  %v5139_v6 = vcombine.low %v7471_v19, %v7483_v21  ;;  %v3734_v44 = vrot.slane %v3732_v31, 5  ;;  %v3740_v60 = vrot.slane %v3738_v18, 5  ;;  %v3744_v11 = vrot.slane %v3742_v48, 4 }
  0xb8   : > { %5819 = vmatprep.mubr.msk.bf16.mxu1 %vm318_vm1, %v5132_v17  ;;  %v3750_v35 = vrot.slane %v3748_v45, 5  ;;  %v3756_v0 = vshll.u32 %v5439_v43, 16  ;;  %v3762_v58 = vshll.u32 %v7488_v40, 16  ;;  %v3766_v61 = vshrl.u32 %v7488_v40, 16  ;;  %v1306_v17 = vld [vmem:[%s6649_s11 + $0x9c] sm:$0xe] }
  0xb9   : > { %v3735_v7 = vor.u32 %v3734_v44, %v3731_v56  ;;  %v3772_v30 = vshll.u32 %v7491_v26, 16  ;;  %v3745_v2 = vor.u32 %v3744_v11, %v3740_v60  ;;  %v3755_v31 = vrot.slane %v3753_v5, 4  ;;  %v5442_v56 = vld [vmem:[%s6649_s11 + $0x30] sm:$0xf] }
  0xba   : > { %v3758_v25 = vrot.slane %v3756_v0, 5  ;;  %v7511_v27 = vsel %vm367_vm0, %v7285_v54, 0  ;;  %5968 = vmatmul.mubr.msk.bf16.gmra.mrb[20].mxu0 %vm318_vm1, %v6430_v15  ;;  %v3764_v18 = vrot.slane %v3762_v58, 5  ;;  %v3768_v48 = vrot.slane %v3766_v61, 4  ;;  %v6432_v58 = vld [vmem:[%s6649_s11 + $0xb4] sm:$0xff]  }
  0xbb   : > { %v3736_v43 = vrot.slane %v3735_v7, 4  ;;  %v3774_v45 = vrot.slane %v3772_v30, 5  ;;  %5971 = vmatprep.mubr.msk.bf16.mxu0 %vm318_vm1, %v6431_v23  ;;  %v3746_v44 = vrot.slane %v3745_v2, 4  ;;  %v5123_v5 = vrot.slane %v1305_v34, 9  ;;  %v7529_v34 = vld [vmem:[%s6649_s11 + $0x34] sm:$0xf] }
  0xbc   : > { %v3759_v11 = vor.u32 %v3758_v25, %v3755_v31  ;;  %v1446_v0 = vrot.slane %v7223_v49, 5  ;;  %v3769_v53 = vor.u32 %v3768_v48, %v3764_v18  ;;  %v1449_v15 = vrot.slane %v7229_v59, 5  ;;  %v6433_v59 = vld [vmem:[%s6649_s11 + $0xc0] sm:$0xff]   ;;  %v7541_v25 = vld [vmem:[%s6649_s11 + $0x38] sm:$0x1] }
  0xbd   : > { %v3741_v54 = vsel %vm6706_vm4, %v3736_v43, %v3740_v60  ;;  %v5124_v7 = vrot.slane %v1306_v17, 9  ;;  %v3751_v61 = vsel %vm6706_vm4, %v3746_v44, %v3750_v35  ;;  %v1453_v2 = vrot.slane %v7236_v51, 5  ;;  %v5445_v17 = vld [vmem:[%s6649_s11 + $0x3c] sm:$0xf]  ;;  %v7555_v51 = vld [vmem:[%s6649_s11 + $0x40] sm:$0xf] }
  0xbe   : > { %v3760_v30 = vrot.slane %v3759_v11, 4  ;;  %v7526_v23 = vsel %vm6833_vm7, %v5123_v5, %v1446_v0  ;;  %v1448_v49 = vrot.slane %v1446_v0, 4  ;;  %v7536_v60 = vcombine.low %v3741_v54, %v3751_v61  ;;  %v7566_v43 = vld [vmem:[%s6649_s11 + $0x44] sm:$0x1] }
  0xbf   : > { %5820 = vmatmul.mubr.msk.bf16.gmra.mrb[8].mxu1 %vm318_vm1, %v5133_v39  ;;  %v3770_v35 = vrot.slane %v3769_v53, 4  ;;  %v1456_v31 = vrot.slane %v7247_v8, 5  ;;  %v3777_v39 = vshrl.u32 %v5442_v56, 16  ;;  %v3780_v53 = vshll.u32 %v5442_v56, 16 }
  0xc0   : > { %5823 = vmatprep.mubr.msk.bf16.mxu1 %vm318_vm1, %v5134_v50  ;;  %v3765_v41 = vsel %vm6706_vm4, %v3760_v30, %v3764_v18  ;;  %v7551_v16 = vsel %vm6833_vm7, %v1448_v49, %v1449_v15  ;;  %v7563_v3 = vsel %vm6833_vm7, %v5124_v7, %v1453_v2  ;;  %v1455_v50 = vrot.slane %v1453_v2, 4 }
  0xc1   : > { %v3775_v8 = vsel %vm6706_vm4, %v3770_v35, %v3774_v45  ;;  %v5140_v37 = vcombine.low %v7526_v23, %v7551_v16  ;;  %v3779_v48 = vrot.slane %v3777_v39, 4  ;;  %v3782_v56 = vrot.slane %v3780_v53, 5  ;;  %v6434_v53 = vld [vmem:[%s6649_s11 + $0xcc] sm:$0xff]  }
  0xc2   : > { %v7568_v18 = vcombine.low %v3765_v41, %v3775_v8  ;;  %v3786_v44 = vshll.u32 %v7529_v34, 16  ;;  %5972 = vmatmul.mubr.msk.bf16.gmra.mrb[24].mxu0 %vm318_vm1, %v6432_v58  ;;  %v7574_v45 = vsel %vm6833_vm7, %v1455_v50, %v1456_v31  ;;  %v3790_v11 = vshrl.u32 %v7529_v34, 16  ;;  %v1307_v58 = vld [vmem:[%s6649_s11 + $0xa8] sm:$0xe] }
  0xc3   : > { %v3796_v5 = vshll.u32 %v7541_v25, 16  ;;  %v3801_v0 = vshrl.u32 %v5445_v17, 16  ;;  %5975 = vmatprep.mubr.msk.bf16.mxu0 %vm318_vm1, %v6433_v59  ;;  %v5141_v54 = vcombine.low %v7563_v3, %v7574_v45  ;;  %v3783_v15 = vor.u32 %v3782_v56, %v3779_v48  ;;  %v1308_v56 = vld [vmem:[%s6649_s11 + $0xb4] sm:$0xe] }
  0xc4   : > { %v3788_v7 = vrot.slane %v3786_v44, 5  ;;  %v3804_v61 = vshll.u32 %v5445_v17, 16  ;;  %v3792_v30 = vrot.slane %v3790_v11, 4  ;;  %v3810_v2 = vshll.u32 %v7555_v51, 16  ;;  %v5448_v11 = vld [vmem:[%s6649_s11 + $0x48] sm:$0xf] }
  0xc5   : > { %v3798_v49 = vrot.slane %v3796_v5, 5  ;;  %v3803_v35 = vrot.slane %v3801_v0, 4  ;;  %v3784_v31 = vrot.slane %v3783_v15, 4  ;;  %v3814_v39 = vshrl.u32 %v7555_v51, 16 }
  0xc6   : > { %v3806_v41 = vrot.slane %v3804_v61, 5  ;;  %v3820_v59 = vshll.u32 %v7566_v43, 16  ;;  %v3793_v17 = vor.u32 %v3792_v30, %v3788_v7  ;;  %v3812_v8 = vrot.slane %v3810_v2, 5  ;;  %v7605_v61 = vld [vmem:[%s6649_s11 + $0x4c] sm:$0xf] }
  0xc7   : > { %5824 = vmatmul.mubr.msk.bf16.gmra.mrb[12].mxu1 %vm318_vm1, %v5135_v22  ;;  %v5125_v50 = vrot.slane %v1307_v58, 9  ;;  %v1460_v48 = vrot.slane %v7258_v52, 5  ;;  %v3789_v44 = vsel %vm6706_vm4, %v3784_v31, %v3788_v7  ;;  %v3816_v14 = vrot.slane %v3814_v39, 4 }
  0xc8   : > { %5827 = vmatprep.mubr.msk.bf16.mxu1 %vm318_vm1, %v5136_v33  ;;  %v3807_v32 = vor.u32 %v3806_v41, %v3803_v35  ;;  %v3822_v22 = vrot.slane %v3820_v59, 5  ;;  %v3794_v5 = vrot.slane %v3793_v17, 4  ;;  %v1463_v52 = vrot.slane %v7269_v38, 5  ;;  %v7627_v59 = vld [vmem:[%s6649_s11 + $0x58] sm:$0xf] }
  0xc9   : > { %v7601_v0 = vsel %vm6833_vm7, %v5125_v50, %v1460_v48  ;;  %v1462_v15 = vrot.slane %v1460_v48, 4  ;;  %v3817_v33 = vor.u32 %v3816_v14, %v3812_v8  ;;  %v5126_v7 = vrot.slane %v1308_v56, 9  ;;  %v7634_v48 = vld [vmem:[%s6649_s11 + $0x5c] sm:$0x1] }
  0xca   : > { %v3808_v13 = vrot.slane %v3807_v32, 4  ;;  %v1467_v58 = vrot.slane %v7278_v28, 5  ;;  %5976 = vmatmul.mubr.msk.bf16.gmra.mrb[28].mxu0 %vm318_vm1, %v6434_v53  ;;  %v3799_v30 = vsel %vm6706_vm4, %v3794_v5, %v3798_v49  ;;  %v1470_v35 = vrot.slane %v7291_v46, 5  ;;  %v5451_v49 = vld [vmem:[%s6649_s11 + $0x54] sm:$0xf] }
  0xcb   : > { %v7616_v38 = vsel %vm6833_vm7, %v1462_v15, %v1463_v52  ;;  %v3825_v2 = vshrl.u32 %v5448_v11, 16  ;;  %5981 = vmatprep.mubr.msk.bf16.mxu0 %vm318_vm1, %v7536_v60  ;;  %v5487_v31 = vcombine.low %v3789_v44, %v3799_v30  ;;  %v3818_v41 = vrot.slane %v3817_v33, 4  ;;  %v5454_v60 = vld [vmem:[%s6649_s11 + $0x60] sm:$0xf]  ;;  %v7661_v30 = vld [vmem:[%s6649_s11 + $0x68] sm:$0x1] }
  0xcc   : > { %v3813_v28 = vsel %vm6706_vm4, %v3808_v13, %v3812_v8  ;;  %v5142_v39 = vcombine.low %v7601_v0, %v7616_v38  ;;  %v7631_v53 = vsel %vm6833_vm7, %v5126_v7, %v1467_v58  ;;  %v1469_v46 = vrot.slane %v1467_v58, 4  ;;  %v7657_v13 = vld [vmem:[%s6649_s11 + $0x64] sm:$0xf] }
  0xcd   : > { %v3827_v17 = vrot.slane %v3825_v2, 4  ;;  %v3828_v50 = vshll.u32 %v5448_v11, 16  ;;  %v3823_v8 = vsel %vm6706_vm4, %v3818_v41, %v3822_v22  ;;  %v3834_v56 = vshll.u32 %v7605_v61, 16 }
  0xce   : > { %v3838_v44 = vshrl.u32 %v7605_v61, 16  ;;  %v3844_v32 = vshll.u32 %v7608_v55, 16  ;;  %v5488_v14 = vcombine.low %v3813_v28, %v3823_v8  ;;  %v7648_v11 = vsel %vm6833_vm7, %v1469_v46, %v1470_v35 }
  0xcf   : > { %5828 = vmatmul.mubr.msk.bf16.gmra.mrb[16].mxu1 %vm318_vm1, %v5137_v29  ;;  %v3830_v5 = vrot.slane %v3828_v50, 5  ;;  %v3849_v15 = vshrl.u32 %v5451_v49, 16  ;;  %v5143_v22 = vcombine.low %v7631_v53, %v7648_v11  ;;  %v3836_v52 = vrot.slane %v3834_v56, 5  ;;  %v7765_v11 = vld [vmem:[%s6649_s11 + $0xa4] sm:$0x1] }
  0xd0   : > { %5831 = vmatprep.mubr.msk.bf16.mxu1 %vm318_vm1, %v5138_v10  ;;  %v3840_v62 = vrot.slane %v3838_v44, 4  ;;  %v3846_v24 = vrot.slane %v3844_v32, 5  ;;  %v3852_v7 = vshll.u32 %v5451_v49, 16  ;;  %v3858_v58 = vshll.u32 %v7627_v59, 16 }
  0xd1   : > { %v3831_v29 = vor.u32 %v3830_v5, %v3827_v17  ;;  %v3851_v33 = vrot.slane %v3849_v15, 4  ;;  %v3862_v57 = vshrl.u32 %v7627_v59, 16  ;;  %v3868_v20 = vshll.u32 %v7634_v48, 16  ;;  %v5457_v5 = vld [vmem:[%s6649_s11 + $0x6c] sm:$0xf] }
  0xd2   : > { %v3841_v35 = vor.u32 %v3840_v62, %v3836_v52  ;;  %v3873_v10 = vshrl.u32 %v5454_v60, 16  ;;  %5982 = vmatmul.mubr.msk.bf16.vlgmr.msra.gmra.mrb[0].mxu0 %vm318_vm1, %v7568_v18  ;;  %v3854_v28 = vrot.slane %v3852_v7, 5  ;;  %v3860_v41 = vrot.slane %v3858_v58, 5  ;;  %v7678_v62 = vld [vmem:[%s6649_s11 + $0x70] sm:$0xf] }
  0xd3   : > { %v3832_v2 = vrot.slane %v3831_v29, 4  ;;  %v3876_v46 = vshll.u32 %v5454_v60, 16  ;;  %6014 = vmatpush3.bf16.msra.mxu0 %v7511_v27  ;;  %5985 = vmatprep.mubr.msk.bf16.mxu0 %vm318_vm1, %v5487_v31  ;;  %v3864_v17 = vrot.slane %v3862_v57, 4  ;;  %v3870_v50 = vrot.slane %v3868_v20, 5  ;;  %v7689_v57 = vld [vmem:[%s6649_s11 + $0x74] sm:$0x1] }
  0xd4   : > { %v3842_v49 = vrot.slane %v3841_v35, 4  ;;  %v3875_v8 = vrot.slane %v3873_v10, 4  ;;  %v3855_v44 = vor.u32 %v3854_v28, %v3851_v33  ;;  %v3882_v18 = vshll.u32 %v7657_v13, 16 }
  0xd5   : > { %v3837_v56 = vsel %vm6706_vm4, %v3832_v2, %v3836_v52  ;;  %v3878_v32 = vrot.slane %v3876_v46, 5  ;;  %v3865_v15 = vor.u32 %v3864_v17, %v3860_v41  ;;  %v3886_v27 = vshrl.u32 %v7657_v13, 16  ;;  %v5460_v2 = vld [vmem:[%s6649_s11 + $0x78] sm:$0xf]  ;;  %v7699_v46 = vld [vmem:[%s6649_s11 + $0x7c] sm:$0xf] }
  0xd6   : > { %v3847_v60 = vsel %vm6706_vm4, %v3842_v49, %v3846_v24  ;;  %v3892_v31 = vshll.u32 %v7661_v30, 16  ;;  %v3856_v29 = vrot.slane %v3855_v44, 4  ;;  %v3884_v7 = vrot.slane %v3882_v18, 5 }
  0xd7   : > { %5832 = vmatmul.mubr.msk.bf16.gmra.mrb[20].mxu1 %vm318_vm1, %v5139_v6  ;;  %v5489_v52 = vcombine.low %v3837_v56, %v3847_v60  ;;  %v3879_v33 = vor.u32 %v3878_v32, %v3875_v8  ;;  %v3866_v24 = vrot.slane %v3865_v15, 4  ;;  %v3888_v58 = vrot.slane %v3886_v27, 4  ;;  %v7707_v32 = vld [vmem:[%s6649_s11 + $0x80] sm:$0x1]  ;;  %v5463_v27 = vld [vmem:[%s6649_s11 + $0x84] sm:$0xf] }
  0xd8   : > { %5835 = vmatprep.mubr.msk.bf16.mxu1 %vm318_vm1, %v5140_v37  ;;  %v3894_v35 = vrot.slane %v3892_v31, 5  ;;  %v3897_v20 = vshrl.u32 %v5457_v5, 16  ;;  %v3861_v19 = vsel %vm6706_vm4, %v3856_v29, %v3860_v41  ;;  %v3900_v6 = vshll.u32 %v5457_v5, 16 }
  0xd9   : > { %v3880_v21 = vrot.slane %v3879_v33, 4  ;;  %v3906_v10 = vshll.u32 %v7678_v62, 16  ;;  %v3871_v23 = vsel %vm6706_vm4, %v3866_v24, %v3870_v50  ;;  %v3889_v16 = vor.u32 %v3888_v58, %v3884_v7 }
  0xda   : > { %v3899_v37 = vrot.slane %v3897_v20, 4  ;;  %v3910_v28 = vshrl.u32 %v7678_v62, 16  ;;  %5986 = vmatmul.mubr.msk.bf16.gmra.mrb[4].mxu0 %vm318_vm1, %v5488_v14  ;;  %v5490_v49 = vcombine.low %v3861_v19, %v3871_v23  ;;  %v3902_v17 = vrot.slane %v3900_v6, 5 }
  0xdb   : > { %v3885_v41 = vsel %vm6706_vm4, %v3880_v21, %v3884_v7  ;;  %v3908_v8 = vrot.slane %v3906_v10, 5  ;;  %5989 = vmatprep.mubr.msk.bf16.mxu0 %vm318_vm1, %v5489_v52  ;;  %v3890_v56 = vrot.slane %v3889_v16, 4  ;;  %v3916_v44 = vshll.u32 %v7689_v57, 16  ;;  %v7715_v7 = vld [vmem:[%s6649_s11 + $0x88] sm:$0xf] }
  0xdc   : > { %v3912_v50 = vrot.slane %v3910_v28, 4  ;;  %v3921_v18 = vshrl.u32 %v5460_v2, 16  ;;  %v3903_v5 = vor.u32 %v3902_v17, %v3899_v37  ;;  %v3924_v60 = vshll.u32 %v5460_v2, 16  ;;  %v5466_v16 = vld [vmem:[%s6649_s11 + $0x90] sm:$0xf] }
  0xdd   : > { %v3930_v14 = vshll.u32 %v7699_v46, 16  ;;  %v3934_v15 = vshrl.u32 %v7699_v46, 16  ;;  %v3895_v31 = vsel %vm6706_vm4, %v3890_v56, %v3894_v35  ;;  %v3918_v52 = vrot.slane %v3916_v44, 5  ;;  %v7736_v28 = vld [vmem:[%s6649_s11 + $0x94] sm:$0xf] }
  0xde   : > { %v3913_v29 = vor.u32 %v3912_v50, %v3908_v8  ;;  %v3923_v33 = vrot.slane %v3921_v18, 4  ;;  %v5491_v24 = vcombine.low %v3885_v41, %v3895_v31  ;;  %v3904_v58 = vrot.slane %v3903_v5, 4  ;;  %v6435_v50 = vld [vmem:[%s6649_s11 + $0xc] sm:$0xff]  }
  0xdf   : > { %5836 = vmatmul.mubr.msk.bf16.gmra.mrb[24].mxu1 %vm318_vm1, %v5141_v54  ;;  %v3926_v20 = vrot.slane %v3924_v60, 5  ;;  %v3932_v19 = vrot.slane %v3930_v14, 5  ;;  %v3936_v21 = vrot.slane %v3934_v15, 4  ;;  %v3940_v6 = vshll.u32 %v7707_v32, 16  ;;  %v7729_v54 = vld [vmem:[%s6649_s11 + $0x8c] sm:$0x1] }
  0xe0   : > { %5839 = vmatprep.mubr.msk.bf16.mxu1 %vm318_vm1, %v5142_v39  ;;  %v3914_v35 = vrot.slane %v3913_v29, 4  ;;  %v3945_v10 = vshrl.u32 %v5463_v27, 16  ;;  %v3909_v3 = vsel %vm6706_vm4, %v3904_v58, %v3908_v8  ;;  %v3948_v2 = vshll.u32 %v5463_v27, 16  ;;  %v5469_v29 = vld [vmem:[%s6649_s11 + $0x9c] sm:$0xf] }
  0xe1   : > { %v3927_v45 = vor.u32 %v3926_v20, %v3923_v33  ;;  %v3954_v23 = vshll.u32 %v7715_v7, 16  ;;  %v3937_v38 = vor.u32 %v3936_v21, %v3932_v19  ;;  %v3942_v39 = vrot.slane %v3940_v6, 5  ;;  %v7753_v20 = vld [vmem:[%s6649_s11 + $0xa0] sm:$0xf] }
  0xe2   : > { %v3919_v0 = vsel %vm6706_vm4, %v3914_v35, %v3918_v52  ;;  %v3947_v37 = vrot.slane %v3945_v10, 4  ;;  %5990 = vmatmul.mubr.msk.bf16.gmra.mrb[8].mxu0 %vm318_vm1, %v5490_v49  ;;  %v3950_v8 = vrot.slane %v3948_v2, 5  ;;  %v3958_v18 = vshrl.u32 %v7715_v7, 16  ;;  %v7746_v49 = vld [vmem:[%s6649_s11 + $0x98] sm:$0x1] }
  0xe3   : > { %v5492_v41 = vcombine.low %v3909_v3, %v3919_v0  ;;  %v3928_v17 = vrot.slane %v3927_v45, 4  ;;  %v3956_v56 = vrot.slane %v3954_v23, 5  ;;  %5993 = vmatprep.mubr.msk.bf16.mxu0 %vm318_vm1, %v5491_v24  ;;  %v3938_v44 = vrot.slane %v3937_v38, 4  ;;  %v5472_v0 = vld [vmem:[%s6649_s11 + $0xa8] sm:$0xf] }
  0xe4   : > { %v3964_v5 = vshll.u32 %v7729_v54, 16  ;;  %v3969_v60 = vshrl.u32 %v5466_v16, 16  ;;  %v3951_v15 = vor.u32 %v3950_v8, %v3947_v37  ;;  %v3972_v27 = vshll.u32 %v5466_v16, 16  ;;  %v6436_v8 = vld [vmem:[%s6649_s11 + $0x18] sm:$0xff]  }
  0xe5   : > { %v3933_v14 = vsel %vm6706_vm4, %v3928_v17, %v3932_v19  ;;  %v3978_v31 = vshll.u32 %v7736_v28, 16  ;;  %v3943_v52 = vsel %vm6706_vm4, %v3938_v44, %v3942_v39  ;;  %v3960_v33 = vrot.slane %v3958_v18, 4 }
  0xe6   : > { %v3966_v24 = vrot.slane %v3964_v5, 5  ;;  %v3971_v58 = vrot.slane %v3969_v60, 4  ;;  %v5493_v19 = vcombine.low %v3933_v14, %v3943_v52  ;;  %v3952_v35 = vrot.slane %v3951_v15, 4  ;;  %v6437_v5 = vld [vmem:[%s6649_s11 + $0x24] sm:$0xff]  }
  0xe7   : > { %5840 = vmatmul.mubr.msk.bf16.gmra.mrb[28].mxu1 %vm318_vm1, %v5143_v22  ;;  %v3974_v21 = vrot.slane %v3972_v27, 5  ;;  %v3980_v6 = vrot.slane %v3978_v31, 5  ;;  %v3961_v10 = vor.u32 %v3960_v33, %v3956_v56  ;;  %v3982_v3 = vshrl.u32 %v7736_v28, 16  ;;  %v7778_v27 = vld [vmem:[%s6649_s11 + $0xac] sm:$0xf] }
  0xe8   : > { %5845 = vmatprep.mubr.msk.bf16.mxu1 %vm318_vm1, %v6435_v50  ;;  %v3988_v45 = vshll.u32 %v7746_v49, 16  ;;  %v3993_v2 = vshrl.u32 %v5469_v29, 16  ;;  %v3957_v23 = vsel %vm6706_vm4, %v3952_v35, %v3956_v56  ;;  %v3996_v22 = vshll.u32 %v5469_v29, 16  ;;  %v5475_v35 = vld [vmem:[%s6649_s11 + $0xb4] sm:$0xf] }
  0xe9   : > { %v3975_v53 = vor.u32 %v3974_v21, %v3971_v58  ;;  %v4002_v16 = vshll.u32 %v7753_v20, 16  ;;  %v3962_v38 = vrot.slane %v3961_v10, 4  ;;  %v3984_v39 = vrot.slane %v3982_v3, 4  ;;  %v7783_v58 = vld [vmem:[%s6649_s11 + $0xb0] sm:$0x1] }
  0xea   : > { %v3990_v37 = vrot.slane %v3988_v45, 5  ;;  %v3995_v17 = vrot.slane %v3993_v2, 4  ;;  %5994 = vmatmul.mubr.msk.bf16.gmra.mrb[12].mxu0 %vm318_vm1, %v5492_v41  ;;  %v3998_v56 = vrot.slane %v3996_v22, 5  ;;  %v4006_v18 = vshrl.u32 %v7753_v20, 16 }
  0xeb   : > { %v3976_v50 = vrot.slane %v3975_v53, 4  ;;  %v4004_v44 = vrot.slane %v4002_v16, 5  ;;  %5997 = vmatprep.mubr.msk.bf16.mxu0 %vm318_vm1, %v5493_v19  ;;  %v3967_v60 = vsel %vm6706_vm4, %v3962_v38, %v3966_v24  ;;  %v3985_v14 = vor.u32 %v3984_v39, %v3980_v6  ;;  %v7795_v16 = vld [vmem:[%s6649_s11 + $0xb8] sm:$0xf] }
  0xec   : > { %v4012_v15 = vshll.u32 %v7765_v11, 16  ;;  %v4017_v31 = vshrl.u32 %v5472_v0, 16  ;;  %v5494_v41 = vcombine.low %v3957_v23, %v3967_v60  ;;  %v3999_v52 = vor.u32 %v3998_v56, %v3995_v17  ;;  %v6438_v60 = vld [vmem:[%s6649_s11 + $0x30] sm:$0xff]  }
  0xed   : > { %v3981_v29 = vsel %vm6706_vm4, %v3976_v50, %v3980_v6  ;;  %v4008_v33 = vrot.slane %v4006_v18, 4  ;;  %v3986_v19 = vrot.slane %v3985_v14, 4  ;;  %v4020_v24 = vshll.u32 %v5472_v0, 16  ;;  %v7800_v50 = vld [vmem:[%s6649_s11 + $0xbc] sm:$0x1] }
  0xee   : > { %v4014_v21 = vrot.slane %v4012_v15, 5  ;;  %v4019_v10 = vrot.slane %v4017_v31, 4  ;;  %v4000_v3 = vrot.slane %v3999_v52, 4  ;;  %v4026_v2 = vshll.u32 %v7778_v27, 16 }
  0xef   : > { %5846 = vmatmul.mubr.msk.bf16.vlgmr.msra.gmra.mrb[0].mxu1 %vm318_vm1, %v6436_v8  ;;  %v4009_v45 = vor.u32 %v4008_v33, %v4004_v44  ;;  %v4030_v23 = vshrl.u32 %v7778_v27, 16  ;;  %v3991_v6 = vsel %vm6706_vm4, %v3986_v19, %v3990_v37  ;;  %v4022_v53 = vrot.slane %v4020_v24, 5  ;;  %v7813_v24 = vld [vmem:[%s6649_s11 + $0xc4] sm:$0xf] }
  0xf0   : > { %5849 = vmatprep.mubr.msk.bf16.mxu1 %vm318_vm1, %v6437_v5  ;;  %6048 = vmatpush3.bf16.msra.mxu1 %v6638_v4  ;;  %v4036_v22 = vshll.u32 %v7783_v58, 16  ;;  %v4041_v0 = vshrl.u32 %v5475_v35, 16  ;;  %v5495_v38 = vcombine.low %v3981_v29, %v3991_v6  ;;  %v4005_v39 = vsel %vm6706_vm4, %v4000_v3, %v4004_v44  ;;  %v5478_v5 = vld [vmem:[%s6649_s11 + $0xc0] sm:$0xf] }
  0xf1   : > { %v4010_v17 = vrot.slane %v4009_v45, 4  ;;  %v4028_v8 = vrot.slane %v4026_v2, 5  ;;  %v4023_v4 = vor.u32 %v4022_v53, %v4019_v10  ;;  %v4032_v56 = vrot.slane %v4030_v23, 4  ;;  %v6439_v29 = vld [vmem:[%s6649_s11 + $0x3c] sm:$0xff]  }
  0xf2   : > { %v4038_v18 = vrot.slane %v4036_v22, 5  ;;  %v4043_v37 = vrot.slane %v4041_v0, 4  ;;  %5998 = vmatmul.mubr.msk.bf16.gmra.mrb[16].mxu0 %vm318_vm1, %v5494_v41  ;;  %v4044_v15 = vshll.u32 %v5475_v35, 16  ;;  %v4050_v44 = vshll.u32 %v7795_v16, 16 }
  0xf3   : > { %v4015_v14 = vsel %vm6706_vm4, %v4010_v17, %v4014_v21  ;;  %v4054_v31 = vshrl.u32 %v7795_v16, 16  ;;  %6001 = vmatprep.mubr.msk.bf16.mxu0 %vm318_vm1, %v5495_v38  ;;  %v4024_v33 = vrot.slane %v4023_v4, 4  ;;  %v4033_v19 = vor.u32 %v4032_v56, %v4028_v8  ;;  %v7816_v21 = vld [vmem:[%s6649_s11 + $0xc8] sm:$0x1]  ;;  %v5481_v17 = vld [vmem:[%s6649_s11 + $0xcc] sm:$0xf] }
  0xf4   : > { %v5496_v52 = vcombine.low %v4005_v39, %v4015_v14  ;;  %v4060_v10 = vshll.u32 %v7800_v50, 16  ;;  %v4046_v41 = vrot.slane %v4044_v15, 5  ;;  %v4052_v3 = vrot.slane %v4050_v44, 5  ;;  %v7829_v14 = vld [vmem:[%s6649_s11 + $0xd0] sm:$0xf] }
  0xf5   : > { %v4056_v45 = vrot.slane %v4054_v31, 4  ;;  %v4065_v35 = vshrl.u32 %v5478_v5, 16  ;;  %v4029_v2 = vsel %vm6706_vm4, %v4024_v33, %v4028_v8  ;;  %v4034_v23 = vrot.slane %v4033_v19, 4 }
  0xf6   : > { %v4062_v6 = vrot.slane %v4060_v10, 5  ;;  %v4068_v53 = vshll.u32 %v5478_v5, 16  ;;  %v4047_v22 = vor.u32 %v4046_v41, %v4043_v37  ;;  %v4074_v39 = vshll.u32 %v7813_v24, 16 }
  0xf7   : > { %5850 = vmatmul.mubr.msk.bf16.gmra.mrb[4].mxu1 %vm318_vm1, %v6438_v60  ;;  %v4057_v0 = vor.u32 %v4056_v45, %v4052_v3  ;;  %v4067_v38 = vrot.slane %v4065_v35, 4  ;;  %v4039_v4 = vsel %vm6706_vm4, %v4034_v23, %v4038_v18  ;;  %v4078_v8 = vshrl.u32 %v7813_v24, 16  ;;  %v6440_v18 = vld [vmem:[%s6649_s11 + $0x48] sm:$0xff]   ;;  %v5517_v23 = vld [vmem:[%s6649_s11 + $0x18] sm:$0xe] }
  0xf8   : > { %5853 = vmatprep.mubr.msk.bf16.mxu1 %vm318_vm1, %v6439_v29  ;;  %v4070_v56 = vrot.slane %v4068_v53, 5  ;;  %v4084_v5 = vshll.u32 %v7816_v21, 16  ;;  %v5497_v37 = vcombine.low %v4029_v2, %v4039_v4  ;;  %v4048_v60 = vrot.slane %v4047_v22, 4  ;;  %v7832_v29 = vld [vmem:[%s6649_s11 + $0xd4] sm:$0x1] }
  0xf9   : > { %v4058_v15 = vrot.slane %v4057_v0, 4  ;;  %v4076_v44 = vrot.slane %v4074_v39, 5  ;;  %v4080_v33 = vrot.slane %v4078_v8, 4  ;;  %v4089_v10 = vshrl.u32 %v5481_v17, 16  ;;  %v6441_v53 = vld [vmem:[%s6649_s11 + $0x54] sm:$0xff]  }
  0xfa   : > { %v4071_v31 = vor.u32 %v4070_v56, %v4067_v38  ;;  %v4086_v19 = vrot.slane %v4084_v5, 5  ;;  %6002 = vmatmul.mubr.msk.bf16.gmra.mrb[20].mxu0 %vm318_vm1, %v5496_v52  ;;  %v4053_v41 = vsel %vm6706_vm4, %v4048_v60, %v4052_v3  ;;  %v4092_v35 = vshll.u32 %v5481_v17, 16  ;;  %v5518_v8 = vld [vmem:[%s6649_s11 + $0x24] sm:$0xe] }
  0xfb   : > { %v4063_v45 = vsel %vm6706_vm4, %v4058_v15, %v4062_v6  ;;  %v4098_v2 = vshll.u32 %v7829_v14, 16  ;;  %6005 = vmatprep.mubr.msk.bf16.mxu0 %vm318_vm1, %v5497_v37  ;;  %v4081_v38 = vor.u32 %v4080_v33, %v4076_v44  ;;  %v4091_v39 = vrot.slane %v4089_v10, 4  ;;  %v5519_v10 = vld [vmem:[%s6649_s11 + $0x30] sm:$0xe] }
  0xfc   : > { %v5498_v22 = vcombine.low %v4053_v41, %v4063_v45  ;;  %v4072_v0 = vrot.slane %v4071_v31, 4  ;;  %v4094_v52 = vrot.slane %v4092_v35, 5  ;;  %v4102_v56 = vshrl.u32 %v7829_v14, 16 }
  0xfd   : > { %v4100_v4 = vrot.slane %v4098_v2, 5  ;;  %v4108_v3 = vshll.u32 %v7832_v29, 16  ;;  %v4082_v17 = vrot.slane %v4081_v38, 4  ;;  %v5533_v5 = vrot.slane %v5517_v23, 9 }
  0xfe   : > { %v4077_v6 = vsel %vm6706_vm4, %v4072_v0, %v4076_v44  ;;  %v4472_v60 = vrot.slane %v7439_v9, 5  ;;  %v4095_v37 = vor.u32 %v4094_v52, %v4091_v39  ;;  %v4104_v15 = vrot.slane %v4102_v56, 4  ;;  %v5520_v39 = vld [vmem:[%s6649_s11 + $0x3c] sm:$0xe] }
  0xff   : > { %5854 = vmatmul.mubr.msk.bf16.gmra.mrb[8].mxu1 %vm318_vm1, %v6440_v18  ;;  %v4110_v31 = vrot.slane %v4108_v3, 5  ;;  %v4475_v33 = vrot.slane %v7452_v36, 5  ;;  %v4087_v41 = vsel %vm6706_vm4, %v4082_v17, %v4086_v19  ;;  %v5534_v9 = vrot.slane %v5518_v8, 9  ;;  %v6442_v3 = vld [vmem:[%s6649_s11 + $0x60] sm:$0xff]   ;;  %v5521_v8 = vld [vmem:[%s6649_s11 + $0x48] sm:$0xe] }
 0x100   : > { %5857 = vmatprep.mubr.msk.bf16.mxu1 %vm318_vm1, %v6441_v53  ;;  %v4473_v44 = vsel %vm6833_vm7, %v5533_v5, %v4472_v60  ;;  %v4474_v45 = vrot.slane %v4472_v60, 4  ;;  %v5499_v18 = vcombine.low %v4077_v6, %v4087_v41  ;;  %v4096_v35 = vrot.slane %v4095_v37, 4  ;;  %v6443_v6 = vld [vmem:[%s6649_s11 + $0x6c] sm:$0xff]  }
 0x101   : > { %v4105_v2 = vor.u32 %v4104_v15, %v4100_v4  ;;  %v4479_v23 = vrot.slane %v7488_v40, 5  ;;  %v8302_v36 = vshll.u32 %v7026_v12, 16  ;;  %v5535_v19 = vrot.slane %v5519_v10, 9  ;;  %v5522_v15 = vld [vmem:[%s6649_s11 + $0x54] sm:$0xe] }
 0x102   : > { %v4476_v53 = vsel %vm6833_vm7, %v4474_v45, %v4475_v33  ;;  %v4486_v38 = vrot.slane %v7529_v34, 5  ;;  %v8303_v52 = vor.u32 %v7038_v1, %v7028_v63  ;;  %6006 = vmatmul.mubr.msk.bf16.gmra.mrb[24].mxu0 %vm318_vm1, %v5498_v22  ;;  %v4482_v12 = vrot.slane %v7491_v26, 5 }
 0x103   : > { %v7861_v0 = vrot.slane %v8302_v36, 5  ;;  %v4106_v40 = vrot.slane %v4105_v2, 4  ;;  %6009 = vmatprep.mubr.msk.bf16.mxu0 %vm318_vm1, %v5499_v18  ;;  %v4101_v34 = vsel %vm6706_vm4, %v4096_v35, %v4100_v4  ;;  %v5550_v17 = vcombine.low %v4473_v44, %v4476_v53  ;;  %v5249_v44 = vld [vmem:[%s6649_s11 + $0x6c] sm:$0xf] }
 0x104   : > { %v7870_v56 = vrot.slane %v8303_v52, 4  ;;  %v7882_v1 = vsel %vm6833_vm7, %v5534_v9, %v4479_v23  ;;  %v4481_v5 = vrot.slane %v4479_v23, 4  ;;  %v5536_v60 = vrot.slane %v5520_v39, 9  ;;  %v6444_v39 = vld [vmem:[%s6649_s11 + $0x78] sm:$0xff]  }
 0x105   : > { %v4111_v22 = vsel %vm6706_vm4, %v4106_v40, %v4110_v31  ;;  %v4493_v26 = vrot.slane %v7555_v51, 5  ;;  %v4496_v37 = vrot.slane %v7566_v43, 5  ;;  %v7891_v33 = vsel %vm6833_vm7, %v5535_v19, %v4486_v38  ;;  %v5252_v19 = vld [vmem:[%s6649_s11 + $0x78] sm:$0xf]  ;;  %v6453_v40 = vld [vmem:[%s6649_s11 + $0x70] sm:$0xf] }
 0x106   : > { %v4488_v4 = vrot.slane %v4486_v38, 4  ;;  %v4489_v10 = vrot.slane %v7541_v25, 5  ;;  %v5537_v41 = vrot.slane %v5521_v8, 9  ;;  %v5500_v45 = vcombine.low %v4101_v34, %v4111_v22  ;;  %v6445_v8 = vld [vmem:[%s6649_s11 + $0x84] sm:$0xff]  }
 0x107   : > { %5858 = vmatmul.mubr.msk.bf16.gmra.mrb[12].mxu1 %vm318_vm1, %v6442_v3  ;;  %v4483_v31 = vsel %vm6833_vm7, %v4481_v5, %v4482_v12  ;;  %v7900_v51 = vsel %vm6833_vm7, %v5536_v60, %v4493_v26  ;;  %v4495_v43 = vrot.slane %v4493_v26, 4  ;;  %v4500_v9 = vrot.slane %v7605_v61, 5  ;;  %v5523_v60 = vld [vmem:[%s6649_s11 + $0x60] sm:$0xe] }
 0x108   : > { %5861 = vmatprep.mubr.msk.bf16.mxu1 %vm318_vm1, %v6443_v6  ;;  %v4503_v25 = vrot.slane %v7608_v55, 5  ;;  %v5538_v18 = vrot.slane %v5522_v15, 9  ;;  %v4507_v35 = vrot.slane %v7627_v59, 5  ;;  %v4510_v23 = vrot.slane %v7634_v48, 5 }
 0x109   : > { %v7908_v2 = vsel %vm6833_vm7, %v4495_v43, %v4496_v37  ;;  %v2366_v36 = vshrl.u32 %v5249_v44, 16  ;;  %v2369_v53 = vshll.u32 %v5249_v44, 16  ;;  %v4490_v38 = vsel %vm6833_vm7, %v4488_v4, %v4489_v10 }
 0x10a   : > { %v5553_v61 = vcombine.low %v7900_v51, %v7908_v2  ;;  %v7918_v55 = vsel %vm6833_vm7, %v5537_v41, %v4500_v9  ;;  %v4502_v59 = vrot.slane %v4500_v9, 4  ;;  %6010 = vmatmul.mubr.msk.bf16.gmra.mrb[28].mxu0 %vm318_vm1, %v5500_v45  ;;  %v7924_v48 = vsel %vm6833_vm7, %v5538_v18, %v4507_v35  ;;  %v6454_v45 = vld [vmem:[%s6649_s11 + $0x74] sm:$0x1] }
 0x10b   : > { %v4509_v52 = vrot.slane %v4507_v35, 4  ;;  %v2368_v3 = vrot.slane %v2366_v36, 4  ;;  %v2375_v12 = vshll.u32 %v6453_v40, 16  ;;  %6015 = vmatprep.mubr.msk.bf16.mxu0 %vm318_vm1, %v5550_v17  ;;  %v2371_v34 = vrot.slane %v2369_v53, 5  ;;  %v5524_v17 = vld [vmem:[%s6649_s11 + $0x6c] sm:$0xe] }
 0x10c   : > { %v7931_v6 = vsel %vm6833_vm7, %v4502_v59, %v4503_v25  ;;  %v2379_v5 = vshrl.u32 %v6453_v40, 16  ;;  %v2390_v22 = vshrl.u32 %v5252_v19, 16  ;;  %v5551_v26 = vcombine.low %v7882_v1, %v4483_v31  ;;  %v5255_v25 = vld [vmem:[%s6649_s11 + $0x84] sm:$0xf] }
 0x10d   : > { %v5552_v37 = vcombine.low %v7891_v33, %v4490_v38  ;;  %v5554_v15 = vcombine.low %v7918_v55, %v7931_v6  ;;  %v7940_v4 = vsel %vm6833_vm7, %v4509_v52, %v4510_v23  ;;  %v7945_v41 = vrot.slane %v2375_v12, 5 }
 0x10e   : > { %v5555_v10 = vcombine.low %v7924_v48, %v7940_v4  ;;  %v2381_v44 = vrot.slane %v2379_v5, 4  ;;  %v2385_v43 = vshll.u32 %v6454_v45, 16  ;;  %v2392_v1 = vrot.slane %v2390_v22, 4  ;;  %v5258_v22 = vld [vmem:[%s6649_s11 + $0x90] sm:$0xf] }
 0x10f   : > { %5862 = vmatmul.mubr.msk.bf16.gmra.mrb[16].mxu1 %vm318_vm1, %v6444_v39  ;;  %v2393_v33 = vshll.u32 %v5252_v19, 16  ;;  %v2412_v31 = vsel %vm6706_vm4, %v7870_v56, %v7861_v0  ;;  %v5539_v9 = vrot.slane %v5523_v60, 9  ;;  %v2372_v18 = vor.u32 %v2371_v34, %v2368_v3  ;;  %v6447_v3 = vld [vmem:[%s6649_s11 + $0x9c] sm:$0xff]   ;;  %v6455_v34 = vld [vmem:[%s6649_s11 + $0x88] sm:$0xf] }
 0x110   : > { %5865 = vmatprep.mubr.msk.bf16.mxu1 %vm318_vm1, %v6445_v8  ;;  %v4514_v35 = vrot.slane %v7657_v13, 5  ;;  %v4517_v23 = vrot.slane %v7661_v30, 5  ;;  %v5540_v36 = vrot.slane %v5524_v17, 9  ;;  %v4521_v19 = vrot.slane %v7678_v62, 5  ;;  %v6446_v13 = vld [vmem:[%s6649_s11 + $0x90] sm:$0xff]  }
 0x111   : > { %v2395_v53 = vrot.slane %v2393_v33, 5  ;;  %v4524_v38 = vrot.slane %v7689_v57, 5  ;;  %v2382_v59 = vor.u32 %v2381_v44, %v7945_v41  ;;  %v2414_v39 = vshrl.u32 %v5255_v25, 16 }
 0x112   : > { %v7962_v0 = vsel %vm6833_vm7, %v5539_v9, %v4514_v35  ;;  %v4516_v56 = vrot.slane %v4514_v35, 4  ;;  %6016 = vmatmul.mubr.msk.bf16.vlgmr.msra.gmra.mrb[0].mxu0 %vm318_vm1, %v5551_v26  ;;  %v7968_v52 = vsel %vm6833_vm7, %v5540_v36, %v4521_v19  ;;  %v4523_v62 = vrot.slane %v4521_v19, 4  ;;  %v6456_v36 = vld [vmem:[%s6649_s11 + $0x8c] sm:$0x1]  ;;  %v6457_v19 = vld [vmem:[%s6649_s11 + $0x94] sm:$0xf] }
 0x113   : > { %v2396_v30 = vor.u32 %v2395_v53, %v2392_v1  ;;  %v2417_v57 = vshll.u32 %v5255_v25, 16  ;;  %6019 = vmatprep.mubr.msk.bf16.mxu0 %vm318_vm1, %v5552_v37  ;;  %v7972_v40 = vrot.slane %v2372_v18, 4  ;;  %v7974_v12 = vrot.slane %v2385_v43, 5 }
 0x114   : > { %v7978_v8 = vsel %vm6833_vm7, %v4516_v56, %v4517_v23  ;;  %v2423_v5 = vshll.u32 %v6455_v34, 16  ;;  %v7986_v17 = vsel %vm6833_vm7, %v4523_v62, %v4524_v38  ;;  %v2416_v37 = vrot.slane %v2414_v39, 4  ;;  %v5525_v56 = vld [vmem:[%s6649_s11 + $0x78] sm:$0xe] }
 0x115   : > { %v2397_v60 = vrot.slane %v2396_v30, 4  ;;  %v5556_v26 = vcombine.low %v7962_v0, %v7978_v8  ;;  %v5557_v44 = vcombine.low %v7968_v52, %v7986_v17  ;;  %v2419_v45 = vrot.slane %v2417_v57, 5  ;;  %v6458_v57 = vld [vmem:[%s6649_s11 + $0x98] sm:$0x1]  ;;  %v6461_v0 = vld [vmem:[%s6649_s11 + $0xa4] sm:$0x1] }
 0x116   : > { %v7990_v43 = vrot.slane %v2423_v5, 5  ;;  %v2427_v1 = vshrl.u32 %v6455_v34, 16  ;;  %v2383_v33 = vrot.slane %v2382_v59, 4  ;;  %v2438_v25 = vshrl.u32 %v5258_v22, 16 }
 0x117   : > { %5866 = vmatmul.mubr.msk.bf16.gmra.mrb[20].mxu1 %vm318_vm1, %v6446_v13  ;;  %v2402_v9 = vsel %vm6706_vm4, %v2397_v60, %v7028_v63  ;;  %v2441_v18 = vshll.u32 %v5258_v22, 16  ;;  %v2433_v53 = vshll.u32 %v6456_v36, 16  ;;  %v2447_v38 = vshll.u32 %v6457_v19, 16 }
 0x118   : > { %5869 = vmatprep.mubr.msk.bf16.mxu1 %vm318_vm1, %v6447_v3  ;;  %v7997_v35 = vcombine.low %v2402_v9, %v2412_v31  ;;  %v2429_v23 = vrot.slane %v2427_v1, 4  ;;  %v2420_v59 = vor.u32 %v2419_v45, %v2416_v37  ;;  %v2440_v39 = vrot.slane %v2438_v25, 4  ;;  %v6448_v31 = vld [vmem:[%s6649_s11 + $0xa8] sm:$0xff]   ;;  %v5526_v37 = vld [vmem:[%s6649_s11 + $0x84] sm:$0xe]  ;;  %v6449_v45 = vld [vmem:[%s6649_s11 + $0xb4] sm:$0xff]  }
 0x119   : > { %v2443_v13 = vrot.slane %v2441_v18, 5  ;;  %v2451_v63 = vshrl.u32 %v6457_v19, 16  ;;  %v8003_v62 = vrot.slane %v2447_v38, 5  ;;  %v2457_v3 = vshll.u32 %v6458_v57, 16 }
 0x11a   : > { %v2430_v30 = vor.u32 %v2429_v23, %v7990_v43  ;;  %6020 = vmatmul.mubr.msk.bf16.gmra.mrb[4].mxu0 %vm318_vm1, %v5553_v61  ;;  %v5541_v22 = vrot.slane %v5525_v56, 9  ;;  %v4528_v60 = vrot.slane %v7699_v46, 5  ;;  %v2378_v51 = vsel %vm6706_vm4, %v7972_v40, %v7945_v41  ;;  %v6459_v56 = vld [vmem:[%s6649_s11 + $0xa0] sm:$0xf] }
 0x11b   : > { %v2444_v34 = vor.u32 %v2443_v13, %v2440_v39  ;;  %v2453_v5 = vrot.slane %v2451_v63, 4  ;;  %6023 = vmatprep.mubr.msk.bf16.mxu0 %vm318_vm1, %v5554_v15  ;;  %v2388_v2 = vsel %vm6706_vm4, %v2383_v33, %v7974_v12  ;;  %v2435_v61 = vrot.slane %v2433_v53, 5  ;;  %v5261_v15 = vld [vmem:[%s6649_s11 + $0x9c] sm:$0xf]  ;;  %v5264_v13 = vld [vmem:[%s6649_s11 + $0xa8] sm:$0xf] }
 0x11c   : > { %v4531_v1 = vrot.slane %v7707_v32, 5  ;;  %v2421_v46 = vrot.slane %v2420_v59, 4  ;;  %v8029_v55 = vsel %vm6833_vm7, %v5541_v22, %v4528_v60  ;;  %v4530_v6 = vrot.slane %v4528_v60, 4 }
 0x11d   : > { %v2454_v9 = vor.u32 %v2453_v5, %v8003_v62  ;;  %v2431_v25 = vrot.slane %v2430_v30, 4  ;;  %v5542_v18 = vrot.slane %v5526_v37, 9  ;;  %v4535_v41 = vrot.slane %v7715_v7, 5  ;;  %v5527_v37 = vld [vmem:[%s6649_s11 + $0x90] sm:$0xe] }
 0x11e   : > { %v4538_v40 = vrot.slane %v7729_v54, 5  ;;  %v2445_v32 = vrot.slane %v2444_v34, 4  ;;  %v2459_v33 = vrot.slane %v2457_v3, 5  ;;  %v8037_v23 = vsel %vm6833_vm7, %v4530_v6, %v4531_v1  ;;  %v5528_v1 = vld [vmem:[%s6649_s11 + $0x9c] sm:$0xe] }
 0x11f   : > { %5870 = vmatmul.mubr.msk.bf16.gmra.mrb[24].mxu1 %vm318_vm1, %v6448_v31  ;;  %v2455_v12 = vrot.slane %v2454_v9, 4  ;;  %v5558_v36 = vcombine.low %v8029_v55, %v8037_v23  ;;  %v8044_v7 = vsel %vm6833_vm7, %v5542_v18, %v4535_v41  ;;  %v4537_v54 = vrot.slane %v4535_v41, 4  ;;  %v6450_v31 = vld [vmem:[%s6649_s11 + $0xc0] sm:$0xff]  }
 0x120   : > { %5873 = vmatprep.mubr.msk.bf16.mxu1 %vm318_vm1, %v6449_v45  ;;  %v2462_v53 = vshrl.u32 %v5261_v15, 16  ;;  %v5282_v19 = vcombine.low %v2378_v51, %v2388_v2  ;;  %v2465_v38 = vshll.u32 %v5261_v15, 16  ;;  %v2471_v59 = vshll.u32 %v6459_v56, 16  ;;  %v6460_v51 = vld [vmem:[%s6649_s11 + $0xac] sm:$0xf] }
 0x121   : > { %v2475_v39 = vshrl.u32 %v6459_v56, 16  ;;  %v2426_v63 = vsel %vm6706_vm4, %v2421_v46, %v7990_v43  ;;  %v2436_v30 = vsel %vm6706_vm4, %v2431_v25, %v2435_v61  ;;  %v8055_v57 = vsel %vm6833_vm7, %v4537_v54, %v4538_v40  ;;  %v5267_v54 = vld [vmem:[%s6649_s11 + $0xb4] sm:$0xf] }
 0x122   : > { %v2464_v3 = vrot.slane %v2462_v53, 4  ;;  %6024 = vmatmul.mubr.msk.bf16.gmra.mrb[8].mxu0 %vm318_vm1, %v5555_v10  ;;  %v5559_v34 = vcombine.low %v8044_v7, %v8055_v57  ;;  %v2467_v43 = vrot.slane %v2465_v38, 5  ;;  %v8064_v5 = vrot.slane %v2471_v59, 5 }
 0x123   : > { %v2477_v22 = vrot.slane %v2475_v39, 4  ;;  %6027 = vmatprep.mubr.msk.bf16.mxu0 %vm318_vm1, %v5556_v26  ;;  %v2450_v48 = vsel %vm6706_vm4, %v2445_v32, %v8003_v62  ;;  %v2460_v4 = vsel %vm6706_vm4, %v2455_v12, %v2459_v33  ;;  %v2486_v10 = vshrl.u32 %v5264_v13, 16  ;;  %v6462_v26 = vld [vmem:[%s6649_s11 + $0xb0] sm:$0x1] }
 0x124   : > { %v2489_v60 = vshll.u32 %v5264_v13, 16  ;;  %v2468_v45 = vor.u32 %v2467_v43, %v2464_v3  ;;  %v2495_v2 = vshll.u32 %v6460_v51, 16  ;;  %v2499_v61 = vshrl.u32 %v6460_v51, 16 }
 0x125   : > { %v2478_v46 = vor.u32 %v2477_v22, %v8064_v5  ;;  %v2481_v8 = vshll.u32 %v6461_v0, 16  ;;  %v2505_v9 = vshll.u32 %v6462_v26, 16  ;;  %v5284_v62 = vcombine.low %v2426_v63, %v2436_v30 }
 0x126   : > { %v8082_v55 = vcombine.low %v2450_v48, %v2460_v4  ;;  %v2488_v6 = vrot.slane %v2486_v10, 4  ;;  %v5543_v15 = vrot.slane %v5527_v37, 9  ;;  %v2491_v25 = vrot.slane %v2489_v60, 5  ;;  %v6464_v10 = vld [vmem:[%s6649_s11 + $0xbc] sm:$0x1] }
 0x127   : > { %5874 = vmatmul.mubr.msk.bf16.gmra.mrb[28].mxu1 %vm318_vm1, %v6450_v31  ;;  %v4542_v18 = vrot.slane %v7736_v28, 5  ;;  %v4545_v41 = vrot.slane %v7746_v49, 5  ;;  %v5544_v40 = vrot.slane %v5528_v1, 9  ;;  %v2469_v32 = vrot.slane %v2468_v45, 4 }
 0x128   : > { %5895 = vmatprep.mubr.msk.bf16.mxu1 %vm318_vm1, %v5282_v19  ;;  %v8087_v12 = vrot.slane %v2495_v2, 5  ;;  %v2501_v33 = vrot.slane %v2499_v61, 4  ;;  %v4549_v23 = vrot.slane %v7753_v20, 5  ;;  %v2479_v53 = vrot.slane %v2478_v46, 4  ;;  %v6465_v2 = vld [vmem:[%s6649_s11 + $0xc4] sm:$0xf] }
 0x129   : > { %v2483_v38 = vrot.slane %v2481_v8, 5  ;;  %v8091_v56 = vrot.slane %v2505_v9, 5  ;;  %v4544_v19 = vrot.slane %v4542_v18, 4  ;;  %v4543_v28 = vsel %vm6833_vm7, %v5543_v15, %v4542_v18  ;;  %v5529_v46 = vld [vmem:[%s6649_s11 + $0xa8] sm:$0xe] }
 0x12a   : > { %6028 = vmatmul.mubr.msk.bf16.gmra.mrb[12].mxu0 %vm318_vm1, %v5557_v44  ;;  %v8101_v49 = vsel %vm6833_vm7, %v5544_v40, %v4549_v23  ;;  %v4551_v20 = vrot.slane %v4549_v23, 4  ;;  %v4552_v59 = vrot.slane %v7765_v11, 5  ;;  %v2492_v39 = vor.u32 %v2491_v25, %v2488_v6  ;;  %v5270_v44 = vld [vmem:[%s6649_s11 + $0xc0] sm:$0xf]  ;;  %v6463_v11 = vld [vmem:[%s6649_s11 + $0xb8] sm:$0xf] }
 0x12b   : > { %6031 = vmatprep.mubr.msk.bf16.mxu0 %vm318_vm1, %v5558_v36  ;;  %v4546_v13 = vsel %vm6833_vm7, %v4544_v19, %v4545_v41  ;;  %v2510_v52 = vshrl.u32 %v5267_v54, 16  ;;  %v2513_v17 = vshll.u32 %v5267_v54, 16  ;;  %v2474_v63 = vsel %vm6706_vm4, %v2469_v32, %v8064_v5 }
 0x12c   : > { %v2502_v30 = vor.u32 %v2501_v33, %v8087_v12  ;;  %v8114_v3 = vsel %vm6833_vm7, %v4551_v20, %v4552_v59  ;;  %v2519_v36 = vshll.u32 %v6463_v11, 16  ;;  %v5560_v31 = vcombine.low %v4543_v28, %v4546_v13  ;;  %v5531_v20 = vld [vmem:[%s6649_s11 + $0xc0] sm:$0xe] }
 0x12d   : > { %v5561_v43 = vcombine.low %v8101_v49, %v8114_v3  ;;  %v2512_v22 = vrot.slane %v2510_v52, 4  ;;  %v2515_v48 = vrot.slane %v2513_v17, 5  ;;  %v2523_v4 = vshrl.u32 %v6463_v11, 16  ;;  %v5532_v52 = vld [vmem:[%s6649_s11 + $0xcc] sm:$0xe] }
 0x12e   : > { %v2521_v5 = vrot.slane %v2519_v36, 5  ;;  %v2529_v60 = vshll.u32 %v6464_v10, 16  ;;  %v2534_v37 = vshrl.u32 %v5270_v44, 16  ;;  %v2537_v51 = vshll.u32 %v5270_v44, 16 }
 0x12f   : > { %5896 = vmatmul.mubr.msk.bf16.vlgmr.msra.gmra.mrb[16].mxu1 %vm318_vm1, %v7997_v35  ;;  %v2516_v45 = vor.u32 %v2515_v48, %v2512_v22  ;;  %v2543_v61 = vshll.u32 %v6465_v2, 16  ;;  %v2547_v1 = vshrl.u32 %v6465_v2, 16  ;;  %v2484_v0 = vsel %vm6706_vm4, %v2479_v53, %v2483_v38  ;;  %v6466_v53 = vld [vmem:[%s6649_s11 + $0xc8] sm:$0x1] }
 0x130   : > { %5899 = vmatprep.mubr.msk.bf16.mxu1 %vm318_vm1, %v5284_v62  ;;  %v2493_v8 = vrot.slane %v2492_v39, 4  ;;  %v2503_v26 = vrot.slane %v2502_v30, 4  ;;  %v2525_v35 = vrot.slane %v2523_v4, 4  ;;  %v2536_v6 = vrot.slane %v2534_v37, 4 }
 0x131   : > { %v2517_v9 = vrot.slane %v2516_v45, 4  ;;  %v2539_v15 = vrot.slane %v2537_v51, 5  ;;  %v2545_v25 = vrot.slane %v2543_v61, 5  ;;  %v2549_v18 = vrot.slane %v2547_v1, 4 }
 0x132   : > { %6032 = vmatmul.mubr.msk.bf16.gmra.mrb[16].mxu0 %vm318_vm1, %v5559_v34  ;;  %v2526_v62 = vor.u32 %v2525_v35, %v2521_v5  ;;  %v5545_v41 = vrot.slane %v5529_v46, 9  ;;  %v4556_v40 = vrot.slane %v7778_v27, 5  ;;  %v5286_v32 = vcombine.low %v2474_v63, %v2484_v0  ;;  %v5530_v34 = vld [vmem:[%s6649_s11 + $0xb4] sm:$0xe]  ;;  %s187_s11 = scalar_lea.vmem [#allocation2], %s5043_s10 }
 0x133   : > { %6035 = vmatprep.mubr.msk.bf16.mxu0 %vm318_vm1, %v5560_v31  ;;  %v2531_v33 = vrot.slane %v2529_v60, 5  ;;  %v4559_v23 = vrot.slane %v7783_v58, 5  ;;  %v2553_v38 = vshll.u32 %v6466_v53, 16  ;;  %v2498_v19 = vsel %vm6706_vm4, %v2493_v8, %v8087_v12  ;;  %s4959_s18 = sshll.u32 %s187_s11, 4  ;;  %s8242_s18 = int_to_ptr.vmem [resolvable:$true] %s4959_s18 }
 0x134   : > { %v2527_v54 = vrot.slane %v2526_v62, 4  ;;  %v4557_v7 = vsel %vm6833_vm7, %v5545_v41, %v4556_v40  ;;  %v4558_v57 = vrot.slane %v4556_v40, 4  ;;  %v2508_v27 = vsel %vm6706_vm4, %v2503_v26, %v8091_v56  ;;  %s6467_s28 = scalar_lea.vmem %s8242_s18, 256  ;;  %p6474_p1 = scmp.lt.s32.totalorder %s8242_s18, %s6472_s15 }
 0x135   : > { %v2522_v58 = vsel %vm6706_vm4, %v2517_v9, %v2521_v5  ;;  %v4563_v28 = vrot.slane %v7795_v16, 5  ;;  %v2540_v59 = vor.u32 %v2539_v15, %v2536_v6  ;;  %v2550_v39 = vor.u32 %v2549_v18, %v2545_v25  ;;  %p6468_p12 = scmp.ne.s32.totalorder %s8242_s18, %s6467_s28  ;;  %p6475_p2 = scmp.lt.s32.totalorder %s6473_s30, %s6467_s28 }
 0x136   : > { %v4560_v13 = vsel %vm6833_vm7, %v4558_v57, %v4559_v23  ;;  %v4570_v12 = vrot.slane %v7813_v24, 5  ;;  %v2532_v56 = vsel %vm6706_vm4, %v2527_v54, %v2531_v33  ;;  %v5546_v44 = vrot.slane %v5530_v34, 9 }
 0x137   : > { %5900 = vmatmul.mubr.msk.bf16.gmra.mrb[20].mxu1 %vm318_vm1, %v8082_v55  ;;  %v5562_v17 = vcombine.low %v4557_v7, %v4560_v13  ;;  %v4566_v16 = vrot.slane %v7800_v50, 5  ;;  %v5287_v63 = vcombine.low %v2498_v19, %v2508_v27  ;;  %v2555_v30 = vrot.slane %v2553_v38, 5  ;;  %p6469_p13 = pnand %p6468_p12, %p6608_p4  ;;  %p6476_p3 = por %p6475_p2, %p6474_p1 }
 0x138   : > { %5903 = vmatprep.mubr.msk.bf16.mxu1 %vm318_vm1, %v5286_v32  ;;  %v4565_v55 = vrot.slane %v4563_v28, 4  ;;  %v5547_v11 = vrot.slane %v5531_v20, 9  ;;  %v4572_v36 = vrot.slane %v4570_v12, 4  ;;  %v4573_v31 = vrot.slane %v7816_v21, 5  ;;  %v8191_v32 = vld [vmem:[%s8294_s2] ss:$0 sm:$0xff] }
 0x139   : > { %v5548_v22 = vrot.slane %v5532_v52, 9  ;;  %v4577_v24 = vrot.slane %v7829_v14, 5  ;;  %v5288_v48 = vcombine.low %v2522_v58, %v2532_v56  ;;  %v2541_v5 = vrot.slane %v2540_v59, 4  ;;  %p6470_p0 = pneg %p6469_p13 }
 0x13a   : > { %6036 = vmatmul.mubr.msk.bf16.gmra.mrb[20].mxu0 %vm318_vm1, %v5561_v43  ;;  %v2551_v4 = vrot.slane %v2550_v39, 4  ;;  %v4580_v50 = vrot.slane %v7832_v29, 5  ;;  %v4564_v10 = vsel %vm6833_vm7, %v5546_v44, %v4563_v28  ;;  %v4567_v21 = vsel %vm6833_vm7, %v4565_v55, %v4566_v16 }
 0x13b   : > { %6039 = vmatprep.mubr.msk.bf16.mxu0 %vm318_vm1, %v5562_v17  ;;  %v4578_v14 = vsel %vm6833_vm7, %v5548_v22, %v4577_v24  ;;  %v4579_v60 = vrot.slane %v4577_v24, 4  ;;  %v4571_v49 = vsel %vm6833_vm7, %v5547_v11, %v4570_v12  ;;  %v4574_v3 = vsel %vm6833_vm7, %v4572_v36, %v4573_v31  ;;  %p6477_p5 = pnand %p6476_p3, %p6470_p0 }
 0x13c   : > { %v5563_v43 = vcombine.low %v4564_v10, %v4567_v21  ;;  %v2546_v45 = vsel %vm6706_vm4, %v2541_v5, %v2545_v25  ;;  %v2556_v51 = vsel %vm6706_vm4, %v2551_v4, %v2555_v30  ;;  %v5564_v2 = vcombine.low %v4571_v49, %v4574_v3 }
 0x13d   : > { %v4581_v29 = vsel %vm6833_vm7, %v4579_v60, %v4580_v50  ;;  %v5289_v61 = vcombine.low %v2546_v45, %v2556_v51 }
 0x13e   : > { %v5565_v37 = vcombine.low %v4578_v14, %v4581_v29 }
 0x13f   : > { %5904 = vmatmul.mubr.msk.bf16.gmra.mrb[24].mxu1 %vm318_vm1, %v5287_v63 }
 0x140   : > { %5907 = vmatprep.mubr.msk.bf16.mxu1 %vm318_vm1, %v5288_v48 }
 0x142   : > { %6040 = vmatmul.mubr.msk.bf16.gmra.mrb[24].mxu0 %vm318_vm1, %v5563_v43 }
 0x143   : > { %6043 = vmatprep.mubr.msk.bf16.mxu0 %vm318_vm1, %v5564_v2 }
 0x147   : > { %5908 = vmatmul.mubr.msk.bf16.gmra.mrb[28].mxu1 %vm318_vm1, %v5289_v61 }
 0x14a   : > { %6044 = vmatmul.mubr.msk.bf16.gmra.mrb[28].mxu0 %vm318_vm1, %v5565_v37 }
 0x1c2   : > { %v5847_v47 = vpop.f32.mrb[0].mxu1 }
 0x1c3   : > { %v1966_v1 = vpop.f32.mrb[1].mxu1  ;;  %v6049_v33 = vadd.f32 %v5847_v47, %v8191_v32 }
 0x1c4   : > { %v5848_v46 = vpop.f32.mrb[2].mxu1  ;;  %v6051_v23 = vadd.f32 %v8191_v32, %v1966_v1 }
 0x1c5   : > { %v1969_v0 = vpop.f32.mrb[3].mxu1  ;;  %v6053_v53 = vadd.f32 %v5848_v46, %v8191_v32 }
 0x1c6   : > { %v6055_v57 = vadd.f32 %v8191_v32, %v1969_v0 }
 0x1ca   : > { %v5851_v8 = vpop.f32.mrb[4].mxu1 }
 0x1cb   : > { %v1982_v26 = vpop.f32.mrb[5].mxu1  ;;  %v6057_v20 = vadd.f32 %v5851_v8, %v8191_v32 }
 0x1cc   : > { %v5852_v35 = vpop.f32.mrb[6].mxu1  ;;  %v6059_v59 = vadd.f32 %v8191_v32, %v1982_v26 }
 0x1cd   : > { %v1985_v9 = vpop.f32.mrb[7].mxu1  ;;  %v6061_v13 = vadd.f32 %v5852_v35, %v8191_v32 }
 0x1ce   : > { %v6063_v56 = vadd.f32 %v8191_v32, %v1985_v9 }
 0x1d2   : > { %v5855_v42 = vpop.f32.mrb[8].mxu1 }
 0x1d3   : > { %v1998_v6 = vpop.f32.mrb[9].mxu1  ;;  %v6065_v55 = vadd.f32 %v5855_v42, %v8191_v32 }
 0x1d4   : > { %v5856_v15 = vpop.f32.mrb[10].mxu1  ;;  %v6067_v11 = vadd.f32 %v8191_v32, %v1998_v6 }
 0x1d5   : > { %v2001_v25 = vpop.f32.mrb[11].mxu1  ;;  %v6069_v31 = vadd.f32 %v5856_v15, %v8191_v32 }
 0x1d6   : > { %v6071_v48 = vadd.f32 %v8191_v32, %v2001_v25 }
 0x1da   : > { %v5859_v62 = vpop.f32.mrb[12].mxu1 }
 0x1db   : > { %v2014_v18 = vpop.f32.mrb[13].mxu1  ;;  %v6073_v14 = vadd.f32 %v5859_v62, %v8191_v32 }
 0x1dc   : > { %v5860_v41 = vpop.f32.mrb[14].mxu1  ;;  %v6075_v60 = vadd.f32 %v8191_v32, %v2014_v18 }
 0x1dd   : > { %v2017_v40 = vpop.f32.mrb[15].mxu1  ;;  %v6077_v3 = vadd.f32 %v5860_v41, %v8191_v32 }
 0x1de   : > { %v6079_v37 = vadd.f32 %v8191_v32, %v2017_v40 }
 0x1e5   : > { %v6017_v54 = vpop.f32.mrb[0].mxu0 }
 0x1e6   : > { %v6050_v38 = vadd.f32 %v6049_v33, %v6017_v54  ;;  %v4717_v7 = vpop.f32.mrb[1].mxu0 }
 0x1e7   : > { %v6018_v34 = vpop.f32.mrb[2].mxu0  ;;  %v6052_v19 = vadd.f32 %v6051_v23, %v4717_v7 }
 0x1e8   : > { %v6054_v27 = vadd.f32 %v6053_v53, %v6018_v34  ;;  %v4720_v58 = vpop.f32.mrb[3].mxu0 }
 0x1e9   : > { %v6056_v28 = vadd.f32 %v6055_v57, %v4720_v58  ;;  %4876 = vxpose.xlu0.b32.start [1/16] (narrow) %v6052_v19, 8 }
 0x1ed   : > { %v6021_v39 = vpop.f32.mrb[4].mxu0  ;;  %4877 = vxpose.xlu0.b32.cont [2/16] (narrow) %v6056_v28, 8 }
 0x1ee   : > { %v6058_v12 = vadd.f32 %v6057_v20, %v6021_v39  ;;  %v4733_v52 = vpop.f32.mrb[5].mxu0 }
 0x1ef   : > { %v6060_v17 = vadd.f32 %v6059_v59, %v4733_v52  ;;  %v6022_v44 = vpop.f32.mrb[6].mxu0 }
 0x1f0   : > { %v6062_v16 = vadd.f32 %v6061_v13, %v6022_v44  ;;  %v4736_v63 = vpop.f32.mrb[7].mxu0 }
 0x1f1   : > { %v6064_v30 = vadd.f32 %v6063_v56, %v4736_v63  ;;  %4878 = vxpose.xlu0.b32.cont [3/16] (narrow) %v6050_v38, 8 }
 0x1f5   : > { %v6025_v36 = vpop.f32.mrb[8].mxu0  ;;  %4879 = vxpose.xlu0.b32.cont [4/16] (narrow) %v6054_v27, 8 }
 0x1f6   : > { %v6066_v22 = vadd.f32 %v6065_v55, %v6025_v36  ;;  %v4749_v24 = vpop.f32.mrb[9].mxu0 }
 0x1f7   : > { %v6068_v5 = vadd.f32 %v6067_v11, %v4749_v24  ;;  %v6026_v4 = vpop.f32.mrb[10].mxu0 }
 0x1f8   : > { %v8205_v50 = vadd.f32 %v6069_v31, %v6026_v4  ;;  %v4752_v10 = vpop.f32.mrb[11].mxu0 }
 0x1f9   : > { %v6072_v21 = vadd.f32 %v6071_v48, %v4752_v10  ;;  %4880 = vxpose.xlu0.b32.cont [5/16] (narrow) %v6060_v17, 8 }
 0x1fd   : > { %v6029_v49 = vpop.f32.mrb[12].mxu0  ;;  %4881 = vxpose.xlu0.b32.cont [6/16] (narrow) %v6064_v30, 8 }
 0x1fe   : > { %v8210_v29 = vadd.f32 %v6073_v14, %v6029_v49  ;;  %v4765_v43 = vpop.f32.mrb[13].mxu0 }
 0x1ff   : > { %v8213_v45 = vadd.f32 %v6075_v60, %v4765_v43  ;;  %v6030_v51 = vpop.f32.mrb[14].mxu0 }
 0x200   : > { %v8215_v2 = vadd.f32 %v6077_v3, %v6030_v51  ;;  %v4768_v61 = vpop.f32.mrb[15].mxu0 }
 0x201   : > { %v8217_v1 = vadd.f32 %v6079_v37, %v4768_v61  ;;  %4882 = vxpose.xlu0.b32.cont [7/16] (narrow) %v6058_v12, 8 }
 0x202   : > { %v5897_v47 = vpop.f32.mrb[16].mxu1 }
 0x203   : > { %v2756_v46 = vpop.f32.mrb[17].mxu1  ;;  %v6081_v8 = vadd.f32 %v5897_v47, %v8191_v32 }
 0x204   : > { %v5898_v0 = vpop.f32.mrb[18].mxu1  ;;  %v6083_v35 = vadd.f32 %v8191_v32, %v2756_v46 }
 0x205   : > { %v2759_v26 = vpop.f32.mrb[19].mxu1  ;;  %v6033_v9 = vpop.f32.mrb[16].mxu0  ;;  %4883 = vxpose.xlu0.b32.cont [8/16] (narrow) %v6062_v16, 8  ;;  %v6085_v42 = vadd.f32 %v5898_v0, %v8191_v32 }
 0x206   : > { %v6082_v6 = vadd.f32 %v6081_v8, %v6033_v9  ;;  %v4781_v15 = vpop.f32.mrb[17].mxu0  ;;  %v6087_v25 = vadd.f32 %v8191_v32, %v2759_v26 }
 0x207   : > { %v6034_v62 = vpop.f32.mrb[18].mxu0  ;;  %v6084_v18 = vadd.f32 %v6083_v35, %v4781_v15 }
 0x208   : > { %v6086_v41 = vadd.f32 %v6085_v42, %v6034_v62  ;;  %v4784_v40 = vpop.f32.mrb[19].mxu0 }
 0x209   : > { %v6088_v23 = vadd.f32 %v6087_v25, %v4784_v40  ;;  %4884 = vxpose.xlu0.b32.cont [9/16] (narrow) %v6068_v5, 8  ;;  %4908 = vxpose.xlu1.b32.start [1/16] (narrow) %v6084_v18, 8 }
 0x20a   : > { %v5901_v33 = vpop.f32.mrb[20].mxu1 }
 0x20b   : > { %v2772_v54 = vpop.f32.mrb[21].mxu1  ;;  %v6089_v38 = vadd.f32 %v5901_v33, %v8191_v32 }
 0x20c   : > { %v5902_v53 = vpop.f32.mrb[22].mxu1  ;;  %v6091_v57 = vadd.f32 %v8191_v32, %v2772_v54 }
 0x20d   : > { %v2775_v7 = vpop.f32.mrb[23].mxu1  ;;  %v6037_v34 = vpop.f32.mrb[20].mxu0  ;;  %4885 = vxpose.xlu0.b32.cont [10/16] (narrow) %v6072_v21, 8  ;;  %4909 = vxpose.xlu1.b32.cont [2/16] (narrow) %v6088_v23, 8  ;;  %v6093_v19 = vadd.f32 %v5902_v53, %v8191_v32 }
 0x20e   : > { %v6090_v27 = vadd.f32 %v6089_v38, %v6037_v34  ;;  %v4797_v58 = vpop.f32.mrb[21].mxu0  ;;  %v6095_v28 = vadd.f32 %v8191_v32, %v2775_v7 }
 0x20f   : > { %v6092_v20 = vadd.f32 %v6091_v57, %v4797_v58  ;;  %v6038_v59 = vpop.f32.mrb[22].mxu0 }
 0x210   : > { %v6094_v39 = vadd.f32 %v6093_v19, %v6038_v59  ;;  %v4800_v13 = vpop.f32.mrb[23].mxu0 }
 0x211   : > { %v6096_v52 = vadd.f32 %v6095_v28, %v4800_v13  ;;  %4886 = vxpose.xlu0.b32.cont [11/16] (narrow) %v6066_v22, 8  ;;  %4910 = vxpose.xlu1.b32.cont [3/16] (narrow) %v6082_v6, 8 }
 0x212   : > { %v5905_v12 = vpop.f32.mrb[24].mxu1 }
 0x213   : > { %v2788_v56 = vpop.f32.mrb[25].mxu1  ;;  %v6097_v44 = vadd.f32 %v5905_v12, %v8191_v32 }
 0x214   : > { %v5906_v17 = vpop.f32.mrb[26].mxu1  ;;  %v6099_v63 = vadd.f32 %v8191_v32, %v2788_v56 }
 0x215   : > { %v2791_v16 = vpop.f32.mrb[27].mxu1  ;;  %v6041_v30 = vpop.f32.mrb[24].mxu0  ;;  %4887 = vxpose.xlu0.b32.cont [12/16] (narrow) %v8205_v50, 8  ;;  %4911 = vxpose.xlu1.b32.cont [4/16] (narrow) %v6086_v41, 8  ;;  %v6101_v55 = vadd.f32 %v5906_v17, %v8191_v32 }
 0x216   : > { %v6098_v11 = vadd.f32 %v6097_v44, %v6041_v30  ;;  %v4813_v36 = vpop.f32.mrb[25].mxu0  ;;  %v6103_v31 = vadd.f32 %v8191_v32, %v2791_v16 }
 0x217   : > { %v6100_v24 = vadd.f32 %v6099_v63, %v4813_v36  ;;  %v6042_v22 = vpop.f32.mrb[26].mxu0 }
 0x218   : > { %v6102_v48 = vadd.f32 %v6101_v55, %v6042_v22  ;;  %v4816_v5 = vpop.f32.mrb[27].mxu0 }
 0x219   : > { %v6104_v10 = vadd.f32 %v6103_v31, %v4816_v5  ;;  %4888 = vxpose.xlu0.b32.cont [13/16] (narrow) %v8213_v45, 8  ;;  %4912 = vxpose.xlu1.b32.cont [5/16] (narrow) %v6092_v20, 8 }
 0x21a   : > { %v5909_v4 = vpop.f32.mrb[28].mxu1 }
 0x21b   : > { %v2804_v21 = vpop.f32.mrb[29].mxu1  ;;  %v6105_v50 = vadd.f32 %v5909_v4, %v8191_v32 }
 0x21c   : > { %v5910_v14 = vpop.f32.mrb[30].mxu1  ;;  %v6107_v49 = vadd.f32 %v8191_v32, %v2804_v21 }
 0x21d   : > { %v2807_v60 = vpop.f32.mrb[31].mxu1  ;;  %v6045_v3 = vpop.f32.mrb[28].mxu0  ;;  %4889 = vxpose.xlu0.b32.cont [14/16] (narrow) %v8217_v1, 8  ;;  %4913 = vxpose.xlu1.b32.cont [6/16] (narrow) %v6096_v52, 8  ;;  %v6109_v43 = vadd.f32 %v5910_v14, %v8191_v32 }
 0x21e   : > { %v6106_v37 = vadd.f32 %v6105_v50, %v6045_v3  ;;  %v4829_v51 = vpop.f32.mrb[29].mxu0  ;;  %v6111_v61 = vadd.f32 %v8191_v32, %v2807_v60 }
 0x21f   : > { %v6108_v47 = vadd.f32 %v6107_v49, %v4829_v51  ;;  %v6046_v45 = vpop.f32.mrb[30].mxu0 }
 0x220   : > { %v6110_v46 = vadd.f32 %v6109_v43, %v6046_v45  ;;  %v4832_v0 = vpop.f32.mrb[31].mxu0 }
 0x221   : > { %v6112_v8 = vadd.f32 %v6111_v61, %v4832_v0  ;;  %4890 = vxpose.xlu0.b32.cont [15/16] (narrow) %v8210_v29, 8  ;;  %4914 = vxpose.xlu1.b32.cont [7/16] (narrow) %v6090_v27, 8 }
 0x225   : > { %4891 = vxpose.xlu0.b32.end [16/16] (narrow) %v8215_v2, 8  ;;  %4915 = vxpose.xlu1.b32.cont [8/16] (narrow) %v6094_v39, 8 }
 0x229   : > { %4916 = vxpose.xlu1.b32.cont [9/16] (narrow) %v6100_v24, 8 }
 0x22d   : > { %4917 = vxpose.xlu1.b32.cont [10/16] (narrow) %v6104_v10, 8 }
 0x231   : > { %4918 = vxpose.xlu1.b32.cont [11/16] (narrow) %v6098_v11, 8 }
 0x235   : > { %4919 = vxpose.xlu1.b32.cont [12/16] (narrow) %v6102_v48, 8 }
 0x239   : > { %4920 = vxpose.xlu1.b32.cont [13/16] (narrow) %v6108_v47, 8 }
 0x23d   : > { %4921 = vxpose.xlu1.b32.cont [14/16] (narrow) %v6112_v8, 8 }
 0x241   : > { %4922 = vxpose.xlu1.b32.cont [15/16] (narrow) %v6106_v37, 8 }
 0x245   : > { %4923 = vxpose.xlu1.b32.end [16/16] (narrow) %v6110_v46, 8 }
 0x269   : > { %v4892_v32 = vpop.trf.xlu0 }
 0x26a   : > { %4940 = vst [vmem:[%s187_s11] sm:$0xff] %v4892_v32 }
 0x289   : > { %v4924_v29 = vpop.trf.xlu1 }
 0x28a   : > { %4941 = vst [vmem:[%s187_s11 + $0x8] sm:$0xff] %v4924_v29 }
 0x28b   : > { %6480 = shalt.err (!%p6477_p5)
}
 0x28c   : > { %s6481_s4 = scalar_lea.hbm %s8247_s26, 256  ;;  %s6485_s7 = scalar_lea.hbm %s8295_s3, 512 }
 0x28d   : > { %p6482_p6 = scmp.ne.s32.totalorder %s8247_s26, %s6481_s4  ;;  %p6486_p10 = scmp.lt.u32.totalorder %s8247_s26, %s8295_s3 }
 0x28e   : > { %p6487_p11 = scmp.lt.u32.totalorder %s6485_s7, %s6481_s4  ;;  %p6489_p13 = scmp.lt.u32.totalorder %s6481_s4, %s8247_s26 }
 0x28f   : > { %p6483_p7 = pnand %p6482_p6, %p6608_p4 }
 0x290   : > { %p6488_p12 = por %p6487_p11, %p6486_p10 }
 0x291   : > { %p6484_p9 = pneg %p6483_p7 }
 0x292   : > { %p6490_p0 = por %p6489_p13, %p6488_p12 }
 0x294   : > { %p6491_p1 = pnand %p6490_p0, %p6484_p9 }
 0x296   : > { %6494 = shalt.err (!%p6491_p1)
}
 0x297   : > { %6348 = dma.vmem_to_hbm [thread:$0]  (%p6608_p4), %s8242_s18, 256, %s8247_s26, %s4943_s27  }
 0x298 PF: > { %p6354_p2 = scmp.ge.s32.totalorder %s6545_s17, 2  ;;  %s4971_s10 = sand.u32 1, %s6525_s12  }
 0x299   : > { %s4972_s11 = scalar_lea.sflag [#allocation3], %s4971_s10 }
 0x29a   : > { %p6351_p3 = pnand %p6354_p2, %p6615_p8 }
 0x29c   : > { %6520 = dma.done.wait (!%p6351_p3), %s4972_s11, 256  }
 0x29d   : > { %6522 = vsyncadd (!%p6351_p3), %s4972_s11, 4294967040  ;;  %s16_s17 = sadd.s32 1, %s6545_s17   ;;  %s8304_s12 = smov %s6529_s13 }
 0x29e   : > { %p13_p5 = scmp.ge.s32.totalorder %s16_s17, 4   ;;  %s8305_s13 = smov %s6533_s14 }
 0x29f   : > { %s8306_s14 = smov %s6621_s25  ;;  %s8307_s15 = smov %s6541_s16 }
 0x2a0   : > { %s8308_s16 = smov %s8310_s20  ;;  %15 = sbr.rel (!%p13_p5) target bundleno = 4 (0x4), region = 77 }
 0x2a7   :  { %4977 = vsyncpa [#allocation3], 1 }
 0x2a8   :  { %4979 = vsyncpa [#allocation3 + $0x1], 1 }

</bundles_post_ra>
